<compile_context>
chip_gen: v7x
topology: tpu7x:2x2x1
jax: 0.10.0
libtpu: 0.0.40
codegen_flags: <defaults>
</compile_context>

<pallas_src>
import functools

import jax
import jax.numpy as jnp
from jax.experimental import pallas as pl
from jax.experimental.pallas import tpu as pltpu


_HIGHEST = jax.lax.Precision.HIGHEST


# ----------------------------------------------------------------------------
# tanh-approximate GELU: the transcendental runs in the EUP slot.
# ----------------------------------------------------------------------------
def _gelu_tanh(x):
    c0 = 0.7978845608028654      # sqrt(2/pi)
    c1 = 0.044715
    return 0.5 * x * (1.0 + jnp.tanh(c0 * x * (1.0 + c1 * x * x)))


# ----------------------------------------------------------------------------
# Fused GatedFFN kernel: one block of Bt images per grid step,
# channels-first flat layout (C, L) with L = pad128(H*W).
# ----------------------------------------------------------------------------
def _gated_ffn_kernel(x_ref, w1_ref, b1_ref, rc_ref, wg_ref, bg_ref,
                      w2_ref, b2_ref, o_ref, *, C, H, W, K, Bt, L, ew_dtype):
    r = K // 2

    w1 = w1_ref[...]                       # (2C, C)  x.dtype
    b1 = b1_ref[...]                       # (2C, 1)  f32
    w2 = w2_ref[...]                       # (C, C)   x.dtype
    b2 = b2_ref[...]                       # (C, 1)   f32
    wg = wg_ref[...]                       # (C, K*K) f32
    bg = bg_ref[...].astype(ew_dtype)      # (C, 1)

    rc = rc_ref[...]                       # (2, L) int32 (row, col) per lane
    row = rc[0:1, :]
    col = rc[1:2, :]

    # Hoisted once per grid step and shared by every image in the block:
    # per-tap masked depthwise weights (C, L).  Taps whose source pixel falls
    # outside the image get weight 0 => exact Conv2d zero-padding semantics
    # (this also kills any roll wrap-around, including into padded lanes).
    taps = []
    t = 0
    for dy in range(-r, r + 1):
        for dx in range(-r, r + 1):
            ok = ((row + dy >= 0) & (row + dy < H)
                  & (col + dx >= 0) & (col + dx < W))          # (1, L) bool
            wmask = jnp.where(ok, wg[:, t:t + 1].astype(ew_dtype), 0.0)  # (C, L)
            taps.append((dy * W + dx, wmask))
            t += 1

    for b in range(Bt):                                        # unrolled
        x = x_ref[b]                                           # (C, L)

        # fn_1: 1x1 conv C -> 2C on the MXU (f32 accumulate) + GELU
        h = jnp.dot(w1, x, preferred_element_type=jnp.float32,
                    precision=_HIGHEST)                        # (2C, L) f32
        h = _gelu_tanh(h + b1).astype(ew_dtype)

        # torch.chunk(h, 2, dim=channels)
        xh = h[:C, :]                                          # (C, L)
        g = h[C:, :]                                           # (C, L)

        # Depthwise KxK conv on the gate half: K*K lane rolls (XLU slot)
        # combined with the precomputed masked weights (2 VALU ops per tap).
        acc = None
        for s, wmask in taps:
            sh = g if s == 0 else pltpu.roll(g, shift=(-s) % L, axis=1)
            term = wmask * sh
            acc = term if acc is None else acc + term
        gate = acc + bg

        # gating multiply + fn_2: 1x1 conv C -> C on the MXU + GELU
        y = (xh * gate).astype(w2.dtype)
        out = jnp.dot(w2, y, preferred_element_type=jnp.float32,
                      precision=_HIGHEST)
        out = _gelu_tanh(out + b2)
        o_ref[b] = out.astype(o_ref.dtype)                     # lane-dense vst


# ----------------------------------------------------------------------------
# Wrapper
# ----------------------------------------------------------------------------
def _pick_images_per_step(B):
    """Largest image block that still leaves >= 2 parallel grid steps."""
    for bt in (8, 4, 2):
        if B % bt == 0 and B // bt >= 2:
            return bt
    return 1


def gated_ffn_forward(x, params):
    """Fused GatedFFN forward. x: (B, C, H, W) NCHW (PyTorch layout)."""
    B, C, H, W = x.shape
    HW = H * W
    w1, b1 = params["fn1_w"], params["fn1_b"]      # (2C, C), (2C,)  <- torch conv weight[:, :, 0, 0]
    wg, bg = params["gate_w"], params["gate_b"]    # (C, K*K), (C,)  <- torch dw weight.reshape(C, K*K)
    w2, b2 = params["fn2_w"], params["fn2_b"]      # (C, C), (C,)
    K = int(round(float(wg.shape[-1]) ** 0.5))
    assert K * K == wg.shape[-1] and K % 2 == 1
    assert w1.shape == (2 * C, C) and w2.shape == (C, C)   # mlp_ratio == 2

    dt = x.dtype
    # Elementwise chain dtype: bf16 for bf16 inputs (v6e/v7x bf16 VPU/EUP),
    # f32 otherwise.  (On v5e keep f32 even for bf16 inputs — no bf16 VPU.)
    ew_dtype = jnp.bfloat16 if dt == jnp.bfloat16 else jnp.float32

    # Lane-dense spatial layout: pad flat H*W to a multiple of 128 so stores
    # stay unmasked vst.  Padded lanes produce garbage that is cropped below
    # (the per-tap masks guarantee they never leak into real positions).
    L = ((HW + 127) // 128) * 128
    xf = x.reshape(B, C, HW)
    if L != HW:
        xf = jnp.pad(xf, ((0, 0), (0, 0), (0, L - HW)))

    # Tiny int32 row/col index vectors (replaces the previous f32 (K*K, HW)
    # mask array: masks are rebuilt in-kernel with two compares per tap).
    q = jnp.arange(L, dtype=jnp.int32)
    rc = jnp.stack([jnp.where(q < HW, q // W, -1),
                    jnp.where(q < HW, q % W, -1)], axis=0)     # (2, L)

    Bt = _pick_images_per_step(B)
    G = B // Bt

    kernel = functools.partial(_gated_ffn_kernel, C=C, H=H, W=W, K=K,
                               Bt=Bt, L=L, ew_dtype=ew_dtype)
    out = pl.pallas_call(
        kernel,
        out_shape=jax.ShapeDtypeStruct((B, C, L), dt),
        grid=(G,),
        in_specs=[
            pl.BlockSpec((Bt, C, L), lambda g: (g, 0, 0)),     # x (Bt images)
            pl.BlockSpec((2 * C, C), lambda g: (0, 0)),        # fn_1 weight
            pl.BlockSpec((2 * C, 1), lambda g: (0, 0)),        # fn_1 bias (f32)
            pl.BlockSpec((2, L), lambda g: (0, 0)),            # row/col indices
            pl.BlockSpec((C, K * K), lambda g: (0, 0)),        # gate dw weight (f32)
            pl.BlockSpec((C, 1), lambda g: (0, 0)),            # gate dw bias (f32)
            pl.BlockSpec((C, C), lambda g: (0, 0)),            # fn_2 weight
            pl.BlockSpec((C, 1), lambda g: (0, 0)),            # fn_2 bias (f32)
        ],
        out_specs=pl.BlockSpec((Bt, C, L), lambda g: (g, 0, 0)),
        compiler_params=pltpu.CompilerParams(
            dimension_semantics=("parallel",),
            vmem_limit_bytes=48 * 1024 * 1024,   # safe headroom on v7x's 64 MiB
        ),
    )(xf,
      w1.astype(dt), b1.reshape(2 * C, 1).astype(jnp.float32),
      rc,
      wg.astype(jnp.float32), bg.reshape(C, 1).astype(jnp.float32),
      w2.astype(dt), b2.reshape(C, 1).astype(jnp.float32))

    if L != HW:
        out = out[:, :, :HW]
    return out.reshape(B, C, H, W)


# ----------------------------------------------------------------------------
# Pure-JAX reference (mirrors the PyTorch module, act = GELU(tanh approx))
# ----------------------------------------------------------------------------
def gated_ffn_reference(x, params):
    B, C, H, W = x.shape
    w1, b1 = params["fn1_w"], params["fn1_b"]
    wg, bg = params["gate_w"], params["gate_b"]
    w2, b2 = params["fn2_w"], params["fn2_b"]
    K = int(round(float(wg.shape[-1]) ** 0.5))
    r = K // 2
    hp = jax.lax.Precision.HIGHEST

    h = jnp.einsum("oi,bihw->bohw", w1, x, precision=hp) + b1[None, :, None, None]
    h = jax.nn.gelu(h, approximate=True)
    xh, g = h[:, :C], h[:, C:]

    gp = jnp.pad(g, ((0, 0), (0, 0), (r, r), (r, r)))
    wk = wg.reshape(C, K, K)
    gate = jnp.broadcast_to(bg[None, :, None, None], xh.shape)
    for i in range(K):
        for j in range(K):
            gate = gate + wk[:, i, j][None, :, None, None] * gp[:, :, i:i + H, j:j + W]

    y = xh * gate
    out = jnp.einsum("oi,bihw->bohw", w2, y, precision=hp) + b2[None, :, None, None]
    return jax.nn.gelu(out, approximate=True)


# ----------------------------------------------------------------------------
if __name__ == "__main__":
    # in_ch=8, mlp_ratio=2, kernel_size=3; B=4 exercises the Bt=2 batching
    # path while keeping a parallel grid of length 2 (v7x megacore).
    B, C, H, W, K = 4, 8, 16, 16, 3

    root = jax.random.PRNGKey(0)
    kx, k1, k2, k3, k4, k5, k6 = jax.random.split(root, 7)
    params = dict(
        fn1_w=0.25 * jax.random.normal(k1, (2 * C, C), jnp.float32),
        fn1_b=0.10 * jax.random.normal(k2, (2 * C,), jnp.float32),
        gate_w=0.25 * jax.random.normal(k3, (C, K * K), jnp.float32),
        gate_b=0.10 * jax.random.normal(k4, (C,), jnp.float32),
        fn2_w=0.25 * jax.random.normal(k5, (C, C), jnp.float32),
        fn2_b=0.10 * jax.random.normal(k6, (C,), jnp.float32),
    )
    x = jax.random.normal(kx, (B, C, H, W), jnp.float32)

    out = jax.jit(gated_ffn_forward)(x, params)
    jax.block_until_ready(out)
    assert out.shape == (B, C, H, W)

    # Both kernel and reference use HIGHEST-precision matmuls and the same
    # tanh-GELU formula, so the tolerance only needs to absorb transcendental
    # implementation differences — tight enough to catch any structural bug
    # (tap ordering / shift direction / masking), which would be O(0.1+).
    ref = gated_ffn_reference(x, params)
    max_err = float(jnp.max(jnp.abs(out - ref)))
    if not (max_err < 5e-3):
        raise AssertionError(f"kernel mismatch vs reference: max abs err = {max_err}")
    print("KERNEL_OK")
</pallas_src>

<mosaic_0001>
module attributes {stable_mosaic.version = 11 : i64} {
  func.func @_gated_ffn_kernel(%arg0: i32, %arg1: memref<2x8x256xf32, #tpu.memory_space<vmem>>, %arg2: memref<16x8xf32, #tpu.memory_space<vmem>>, %arg3: memref<16x1xf32, #tpu.memory_space<vmem>>, %arg4: memref<2x256xi32, #tpu.memory_space<vmem>>, %arg5: memref<8x9xf32, #tpu.memory_space<vmem>>, %arg6: memref<8x1xf32, #tpu.memory_space<vmem>>, %arg7: memref<8x8xf32, #tpu.memory_space<vmem>>, %arg8: memref<8x1xf32, #tpu.memory_space<vmem>>, %arg9: memref<2x8x256xf32, #tpu.memory_space<vmem>>) attributes {dimension_semantics = [#tpu.dimension_semantics<parallel>], iteration_bounds = array<i64: 2>, scalar_prefetch = 0 : i64, scratch_operands = 0 : i64, tpu.core_type = #tpu.core_type<tc>, window_params = [{transform_indices = @transform_0, window_bounds = array<i64: 2, 8, 256>}, {pipeline_mode = #tpu.pipeline_mode<synchronous>, transform_indices = @transform_1, window_bounds = array<i64: 16, 8>}, {pipeline_mode = #tpu.pipeline_mode<synchronous>, transform_indices = @transform_2, window_bounds = array<i64: 16, 1>}, {pipeline_mode = #tpu.pipeline_mode<synchronous>, transform_indices = @transform_3, window_bounds = array<i64: 2, 256>}, {pipeline_mode = #tpu.pipeline_mode<synchronous>, transform_indices = @transform_4, window_bounds = array<i64: 8, 9>}, {pipeline_mode = #tpu.pipeline_mode<synchronous>, transform_indices = @transform_5, window_bounds = array<i64: 8, 1>}, {pipeline_mode = #tpu.pipeline_mode<synchronous>, transform_indices = @transform_6, window_bounds = array<i64: 8, 8>}, {pipeline_mode = #tpu.pipeline_mode<synchronous>, transform_indices = @transform_7, window_bounds = array<i64: 8, 1>}, {transform_indices = @transform_8, window_bounds = array<i64: 2, 8, 256>}]} {
    %c0 = arith.constant 0 : index
    %c0_0 = arith.constant 0 : index
    %0 = vector.load %arg2[%c0, %c0_0] : memref<16x8xf32, #tpu.memory_space<vmem>>, vector<16x8xf32>
    %c0_1 = arith.constant 0 : index
    %c0_2 = arith.constant 0 : index
    %1 = vector.load %arg3[%c0_1, %c0_2] : memref<16x1xf32, #tpu.memory_space<vmem>>, vector<16x1xf32>
    %c0_3 = arith.constant 0 : index
    %c0_4 = arith.constant 0 : index
    %2 = vector.load %arg7[%c0_3, %c0_4] : memref<8x8xf32, #tpu.memory_space<vmem>>, vector<8x8xf32>
    %c0_5 = arith.constant 0 : index
    %c0_6 = arith.constant 0 : index
    %3 = vector.load %arg8[%c0_5, %c0_6] : memref<8x1xf32, #tpu.memory_space<vmem>>, vector<8x1xf32>
    %c0_7 = arith.constant 0 : index
    %c0_8 = arith.constant 0 : index
    %4 = vector.load %arg5[%c0_7, %c0_8] : memref<8x9xf32, #tpu.memory_space<vmem>>, vector<8x9xf32>
    %c0_9 = arith.constant 0 : index
    %c0_10 = arith.constant 0 : index
    %5 = vector.load %arg6[%c0_9, %c0_10] : memref<8x1xf32, #tpu.memory_space<vmem>>, vector<8x1xf32>
    %c0_11 = arith.constant 0 : index
    %c0_12 = arith.constant 0 : index
    %6 = vector.load %arg4[%c0_11, %c0_12] : memref<2x256xi32, #tpu.memory_space<vmem>>, vector<2x256xi32>
    %7 = vector.extract_strided_slice %6 {offsets = [0, 0], sizes = [1, 256], strides = [1, 1]} : vector<2x256xi32> to vector<1x256xi32>
    %8 = vector.extract_strided_slice %6 {offsets = [1, 0], sizes = [1, 256], strides = [1, 1]} : vector<2x256xi32> to vector<1x256xi32>
    %c-1_i32 = arith.constant -1 : i32
    %9 = vector.broadcast %c-1_i32 : i32 to vector<1x256xi32>
    %10 = arith.addi %7, %9 : vector<1x256xi32>
    %c0_i32 = arith.constant 0 : i32
    %11 = vector.broadcast %c0_i32 : i32 to vector<1x256xi32>
    %12 = arith.cmpi sge, %10, %11 : vector<1x256xi32>
    %c-1_i32_13 = arith.constant -1 : i32
    %13 = vector.broadcast %c-1_i32_13 : i32 to vector<1x256xi32>
    %14 = arith.addi %7, %13 : vector<1x256xi32>
    %c16_i32 = arith.constant 16 : i32
    %15 = vector.broadcast %c16_i32 : i32 to vector<1x256xi32>
    %16 = arith.cmpi slt, %14, %15 : vector<1x256xi32>
    %17 = arith.andi %12, %16 : vector<1x256xi1>
    %c-1_i32_14 = arith.constant -1 : i32
    %18 = vector.broadcast %c-1_i32_14 : i32 to vector<1x256xi32>
    %19 = arith.addi %8, %18 : vector<1x256xi32>
    %c0_i32_15 = arith.constant 0 : i32
    %20 = vector.broadcast %c0_i32_15 : i32 to vector<1x256xi32>
    %21 = arith.cmpi sge, %19, %20 : vector<1x256xi32>
    %22 = arith.andi %17, %21 : vector<1x256xi1>
    %c-1_i32_16 = arith.constant -1 : i32
    %23 = vector.broadcast %c-1_i32_16 : i32 to vector<1x256xi32>
    %24 = arith.addi %8, %23 : vector<1x256xi32>
    %c16_i32_17 = arith.constant 16 : i32
    %25 = vector.broadcast %c16_i32_17 : i32 to vector<1x256xi32>
    %26 = arith.cmpi slt, %24, %25 : vector<1x256xi32>
    %27 = arith.andi %22, %26 : vector<1x256xi1>
    %28 = vector.extract_strided_slice %4 {offsets = [0, 0], sizes = [8, 1], strides = [1, 1]} : vector<8x9xf32> to vector<8x1xf32>
    %cst = arith.constant 0.000000e+00 : f32
    %29 = vector.shape_cast %27 : vector<1x256xi1> to vector<1x256xi1>
    %30 = vector.broadcast %29 : vector<1x256xi1> to vector<8x256xi1>
    %31 = vector.shape_cast %28 : vector<8x1xf32> to vector<8x1xf32>
    %32 = vector.broadcast %31 : vector<8x1xf32> to vector<8x256xf32>
    %33 = vector.broadcast %cst : f32 to vector<8x256xf32>
    %34 = arith.select %30, %32, %33 : vector<8x256xi1>, vector<8x256xf32>
    %c-1_i32_18 = arith.constant -1 : i32
    %35 = vector.broadcast %c-1_i32_18 : i32 to vector<1x256xi32>
    %36 = arith.addi %7, %35 : vector<1x256xi32>
    %c0_i32_19 = arith.constant 0 : i32
    %37 = vector.broadcast %c0_i32_19 : i32 to vector<1x256xi32>
    %38 = arith.cmpi sge, %36, %37 : vector<1x256xi32>
    %c-1_i32_20 = arith.constant -1 : i32
    %39 = vector.broadcast %c-1_i32_20 : i32 to vector<1x256xi32>
    %40 = arith.addi %7, %39 : vector<1x256xi32>
    %c16_i32_21 = arith.constant 16 : i32
    %41 = vector.broadcast %c16_i32_21 : i32 to vector<1x256xi32>
    %42 = arith.cmpi slt, %40, %41 : vector<1x256xi32>
    %43 = arith.andi %38, %42 : vector<1x256xi1>
    %c0_i32_22 = arith.constant 0 : i32
    %44 = vector.broadcast %c0_i32_22 : i32 to vector<1x256xi32>
    %45 = arith.addi %8, %44 : vector<1x256xi32>
    %c0_i32_23 = arith.constant 0 : i32
    %46 = vector.broadcast %c0_i32_23 : i32 to vector<1x256xi32>
    %47 = arith.cmpi sge, %45, %46 : vector<1x256xi32>
    %48 = arith.andi %43, %47 : vector<1x256xi1>
    %c0_i32_24 = arith.constant 0 : i32
    %49 = vector.broadcast %c0_i32_24 : i32 to vector<1x256xi32>
    %50 = arith.addi %8, %49 : vector<1x256xi32>
    %c16_i32_25 = arith.constant 16 : i32
    %51 = vector.broadcast %c16_i32_25 : i32 to vector<1x256xi32>
    %52 = arith.cmpi slt, %50, %51 : vector<1x256xi32>
    %53 = arith.andi %48, %52 : vector<1x256xi1>
    %54 = vector.extract_strided_slice %4 {offsets = [0, 1], sizes = [8, 1], strides = [1, 1]} : vector<8x9xf32> to vector<8x1xf32>
    %cst_26 = arith.constant 0.000000e+00 : f32
    %55 = vector.shape_cast %53 : vector<1x256xi1> to vector<1x256xi1>
    %56 = vector.broadcast %55 : vector<1x256xi1> to vector<8x256xi1>
    %57 = vector.shape_cast %54 : vector<8x1xf32> to vector<8x1xf32>
    %58 = vector.broadcast %57 : vector<8x1xf32> to vector<8x256xf32>
    %59 = vector.broadcast %cst_26 : f32 to vector<8x256xf32>
    %60 = arith.select %56, %58, %59 : vector<8x256xi1>, vector<8x256xf32>
    %c-1_i32_27 = arith.constant -1 : i32
    %61 = vector.broadcast %c-1_i32_27 : i32 to vector<1x256xi32>
    %62 = arith.addi %7, %61 : vector<1x256xi32>
    %c0_i32_28 = arith.constant 0 : i32
    %63 = vector.broadcast %c0_i32_28 : i32 to vector<1x256xi32>
    %64 = arith.cmpi sge, %62, %63 : vector<1x256xi32>
    %c-1_i32_29 = arith.constant -1 : i32
    %65 = vector.broadcast %c-1_i32_29 : i32 to vector<1x256xi32>
    %66 = arith.addi %7, %65 : vector<1x256xi32>
    %c16_i32_30 = arith.constant 16 : i32
    %67 = vector.broadcast %c16_i32_30 : i32 to vector<1x256xi32>
    %68 = arith.cmpi slt, %66, %67 : vector<1x256xi32>
    %69 = arith.andi %64, %68 : vector<1x256xi1>
    %c1_i32 = arith.constant 1 : i32
    %70 = vector.broadcast %c1_i32 : i32 to vector<1x256xi32>
    %71 = arith.addi %8, %70 : vector<1x256xi32>
    %c0_i32_31 = arith.constant 0 : i32
    %72 = vector.broadcast %c0_i32_31 : i32 to vector<1x256xi32>
    %73 = arith.cmpi sge, %71, %72 : vector<1x256xi32>
    %74 = arith.andi %69, %73 : vector<1x256xi1>
    %c1_i32_32 = arith.constant 1 : i32
    %75 = vector.broadcast %c1_i32_32 : i32 to vector<1x256xi32>
    %76 = arith.addi %8, %75 : vector<1x256xi32>
    %c16_i32_33 = arith.constant 16 : i32
    %77 = vector.broadcast %c16_i32_33 : i32 to vector<1x256xi32>
    %78 = arith.cmpi slt, %76, %77 : vector<1x256xi32>
    %79 = arith.andi %74, %78 : vector<1x256xi1>
    %80 = vector.extract_strided_slice %4 {offsets = [0, 2], sizes = [8, 1], strides = [1, 1]} : vector<8x9xf32> to vector<8x1xf32>
    %cst_34 = arith.constant 0.000000e+00 : f32
    %81 = vector.shape_cast %79 : vector<1x256xi1> to vector<1x256xi1>
    %82 = vector.broadcast %81 : vector<1x256xi1> to vector<8x256xi1>
    %83 = vector.shape_cast %80 : vector<8x1xf32> to vector<8x1xf32>
    %84 = vector.broadcast %83 : vector<8x1xf32> to vector<8x256xf32>
    %85 = vector.broadcast %cst_34 : f32 to vector<8x256xf32>
    %86 = arith.select %82, %84, %85 : vector<8x256xi1>, vector<8x256xf32>
    %c0_i32_35 = arith.constant 0 : i32
    %87 = vector.broadcast %c0_i32_35 : i32 to vector<1x256xi32>
    %88 = arith.addi %7, %87 : vector<1x256xi32>
    %c0_i32_36 = arith.constant 0 : i32
    %89 = vector.broadcast %c0_i32_36 : i32 to vector<1x256xi32>
    %90 = arith.cmpi sge, %88, %89 : vector<1x256xi32>
    %c0_i32_37 = arith.constant 0 : i32
    %91 = vector.broadcast %c0_i32_37 : i32 to vector<1x256xi32>
    %92 = arith.addi %7, %91 : vector<1x256xi32>
    %c16_i32_38 = arith.constant 16 : i32
    %93 = vector.broadcast %c16_i32_38 : i32 to vector<1x256xi32>
    %94 = arith.cmpi slt, %92, %93 : vector<1x256xi32>
    %95 = arith.andi %90, %94 : vector<1x256xi1>
    %c-1_i32_39 = arith.constant -1 : i32
    %96 = vector.broadcast %c-1_i32_39 : i32 to vector<1x256xi32>
    %97 = arith.addi %8, %96 : vector<1x256xi32>
    %c0_i32_40 = arith.constant 0 : i32
    %98 = vector.broadcast %c0_i32_40 : i32 to vector<1x256xi32>
    %99 = arith.cmpi sge, %97, %98 : vector<1x256xi32>
    %100 = arith.andi %95, %99 : vector<1x256xi1>
    %c-1_i32_41 = arith.constant -1 : i32
    %101 = vector.broadcast %c-1_i32_41 : i32 to vector<1x256xi32>
    %102 = arith.addi %8, %101 : vector<1x256xi32>
    %c16_i32_42 = arith.constant 16 : i32
    %103 = vector.broadcast %c16_i32_42 : i32 to vector<1x256xi32>
    %104 = arith.cmpi slt, %102, %103 : vector<1x256xi32>
    %105 = arith.andi %100, %104 : vector<1x256xi1>
    %106 = vector.extract_strided_slice %4 {offsets = [0, 3], sizes = [8, 1], strides = [1, 1]} : vector<8x9xf32> to vector<8x1xf32>
    %cst_43 = arith.constant 0.000000e+00 : f32
    %107 = vector.shape_cast %105 : vector<1x256xi1> to vector<1x256xi1>
    %108 = vector.broadcast %107 : vector<1x256xi1> to vector<8x256xi1>
    %109 = vector.shape_cast %106 : vector<8x1xf32> to vector<8x1xf32>
    %110 = vector.broadcast %109 : vector<8x1xf32> to vector<8x256xf32>
    %111 = vector.broadcast %cst_43 : f32 to vector<8x256xf32>
    %112 = arith.select %108, %110, %111 : vector<8x256xi1>, vector<8x256xf32>
    %c0_i32_44 = arith.constant 0 : i32
    %113 = vector.broadcast %c0_i32_44 : i32 to vector<1x256xi32>
    %114 = arith.addi %7, %113 : vector<1x256xi32>
    %c0_i32_45 = arith.constant 0 : i32
    %115 = vector.broadcast %c0_i32_45 : i32 to vector<1x256xi32>
    %116 = arith.cmpi sge, %114, %115 : vector<1x256xi32>
    %c0_i32_46 = arith.constant 0 : i32
    %117 = vector.broadcast %c0_i32_46 : i32 to vector<1x256xi32>
    %118 = arith.addi %7, %117 : vector<1x256xi32>
    %c16_i32_47 = arith.constant 16 : i32
    %119 = vector.broadcast %c16_i32_47 : i32 to vector<1x256xi32>
    %120 = arith.cmpi slt, %118, %119 : vector<1x256xi32>
    %121 = arith.andi %116, %120 : vector<1x256xi1>
    %c0_i32_48 = arith.constant 0 : i32
    %122 = vector.broadcast %c0_i32_48 : i32 to vector<1x256xi32>
    %123 = arith.addi %8, %122 : vector<1x256xi32>
    %c0_i32_49 = arith.constant 0 : i32
    %124 = vector.broadcast %c0_i32_49 : i32 to vector<1x256xi32>
    %125 = arith.cmpi sge, %123, %124 : vector<1x256xi32>
    %126 = arith.andi %121, %125 : vector<1x256xi1>
    %c0_i32_50 = arith.constant 0 : i32
    %127 = vector.broadcast %c0_i32_50 : i32 to vector<1x256xi32>
    %128 = arith.addi %8, %127 : vector<1x256xi32>
    %c16_i32_51 = arith.constant 16 : i32
    %129 = vector.broadcast %c16_i32_51 : i32 to vector<1x256xi32>
    %130 = arith.cmpi slt, %128, %129 : vector<1x256xi32>
    %131 = arith.andi %126, %130 : vector<1x256xi1>
    %132 = vector.extract_strided_slice %4 {offsets = [0, 4], sizes = [8, 1], strides = [1, 1]} : vector<8x9xf32> to vector<8x1xf32>
    %cst_52 = arith.constant 0.000000e+00 : f32
    %133 = vector.shape_cast %131 : vector<1x256xi1> to vector<1x256xi1>
    %134 = vector.broadcast %133 : vector<1x256xi1> to vector<8x256xi1>
    %135 = vector.shape_cast %132 : vector<8x1xf32> to vector<8x1xf32>
    %136 = vector.broadcast %135 : vector<8x1xf32> to vector<8x256xf32>
    %137 = vector.broadcast %cst_52 : f32 to vector<8x256xf32>
    %138 = arith.select %134, %136, %137 : vector<8x256xi1>, vector<8x256xf32>
    %c0_i32_53 = arith.constant 0 : i32
    %139 = vector.broadcast %c0_i32_53 : i32 to vector<1x256xi32>
    %140 = arith.addi %7, %139 : vector<1x256xi32>
    %c0_i32_54 = arith.constant 0 : i32
    %141 = vector.broadcast %c0_i32_54 : i32 to vector<1x256xi32>
    %142 = arith.cmpi sge, %140, %141 : vector<1x256xi32>
    %c0_i32_55 = arith.constant 0 : i32
    %143 = vector.broadcast %c0_i32_55 : i32 to vector<1x256xi32>
    %144 = arith.addi %7, %143 : vector<1x256xi32>
    %c16_i32_56 = arith.constant 16 : i32
    %145 = vector.broadcast %c16_i32_56 : i32 to vector<1x256xi32>
    %146 = arith.cmpi slt, %144, %145 : vector<1x256xi32>
    %147 = arith.andi %142, %146 : vector<1x256xi1>
    %c1_i32_57 = arith.constant 1 : i32
    %148 = vector.broadcast %c1_i32_57 : i32 to vector<1x256xi32>
    %149 = arith.addi %8, %148 : vector<1x256xi32>
    %c0_i32_58 = arith.constant 0 : i32
    %150 = vector.broadcast %c0_i32_58 : i32 to vector<1x256xi32>
    %151 = arith.cmpi sge, %149, %150 : vector<1x256xi32>
    %152 = arith.andi %147, %151 : vector<1x256xi1>
    %c1_i32_59 = arith.constant 1 : i32
    %153 = vector.broadcast %c1_i32_59 : i32 to vector<1x256xi32>
    %154 = arith.addi %8, %153 : vector<1x256xi32>
    %c16_i32_60 = arith.constant 16 : i32
    %155 = vector.broadcast %c16_i32_60 : i32 to vector<1x256xi32>
    %156 = arith.cmpi slt, %154, %155 : vector<1x256xi32>
    %157 = arith.andi %152, %156 : vector<1x256xi1>
    %158 = vector.extract_strided_slice %4 {offsets = [0, 5], sizes = [8, 1], strides = [1, 1]} : vector<8x9xf32> to vector<8x1xf32>
    %cst_61 = arith.constant 0.000000e+00 : f32
    %159 = vector.shape_cast %157 : vector<1x256xi1> to vector<1x256xi1>
    %160 = vector.broadcast %159 : vector<1x256xi1> to vector<8x256xi1>
    %161 = vector.shape_cast %158 : vector<8x1xf32> to vector<8x1xf32>
    %162 = vector.broadcast %161 : vector<8x1xf32> to vector<8x256xf32>
    %163 = vector.broadcast %cst_61 : f32 to vector<8x256xf32>
    %164 = arith.select %160, %162, %163 : vector<8x256xi1>, vector<8x256xf32>
    %c1_i32_62 = arith.constant 1 : i32
    %165 = vector.broadcast %c1_i32_62 : i32 to vector<1x256xi32>
    %166 = arith.addi %7, %165 : vector<1x256xi32>
    %c0_i32_63 = arith.constant 0 : i32
    %167 = vector.broadcast %c0_i32_63 : i32 to vector<1x256xi32>
    %168 = arith.cmpi sge, %166, %167 : vector<1x256xi32>
    %c1_i32_64 = arith.constant 1 : i32
    %169 = vector.broadcast %c1_i32_64 : i32 to vector<1x256xi32>
    %170 = arith.addi %7, %169 : vector<1x256xi32>
    %c16_i32_65 = arith.constant 16 : i32
    %171 = vector.broadcast %c16_i32_65 : i32 to vector<1x256xi32>
    %172 = arith.cmpi slt, %170, %171 : vector<1x256xi32>
    %173 = arith.andi %168, %172 : vector<1x256xi1>
    %c-1_i32_66 = arith.constant -1 : i32
    %174 = vector.broadcast %c-1_i32_66 : i32 to vector<1x256xi32>
    %175 = arith.addi %8, %174 : vector<1x256xi32>
    %c0_i32_67 = arith.constant 0 : i32
    %176 = vector.broadcast %c0_i32_67 : i32 to vector<1x256xi32>
    %177 = arith.cmpi sge, %175, %176 : vector<1x256xi32>
    %178 = arith.andi %173, %177 : vector<1x256xi1>
    %c-1_i32_68 = arith.constant -1 : i32
    %179 = vector.broadcast %c-1_i32_68 : i32 to vector<1x256xi32>
    %180 = arith.addi %8, %179 : vector<1x256xi32>
    %c16_i32_69 = arith.constant 16 : i32
    %181 = vector.broadcast %c16_i32_69 : i32 to vector<1x256xi32>
    %182 = arith.cmpi slt, %180, %181 : vector<1x256xi32>
    %183 = arith.andi %178, %182 : vector<1x256xi1>
    %184 = vector.extract_strided_slice %4 {offsets = [0, 6], sizes = [8, 1], strides = [1, 1]} : vector<8x9xf32> to vector<8x1xf32>
    %cst_70 = arith.constant 0.000000e+00 : f32
    %185 = vector.shape_cast %183 : vector<1x256xi1> to vector<1x256xi1>
    %186 = vector.broadcast %185 : vector<1x256xi1> to vector<8x256xi1>
    %187 = vector.shape_cast %184 : vector<8x1xf32> to vector<8x1xf32>
    %188 = vector.broadcast %187 : vector<8x1xf32> to vector<8x256xf32>
    %189 = vector.broadcast %cst_70 : f32 to vector<8x256xf32>
    %190 = arith.select %186, %188, %189 : vector<8x256xi1>, vector<8x256xf32>
    %c1_i32_71 = arith.constant 1 : i32
    %191 = vector.broadcast %c1_i32_71 : i32 to vector<1x256xi32>
    %192 = arith.addi %7, %191 : vector<1x256xi32>
    %c0_i32_72 = arith.constant 0 : i32
    %193 = vector.broadcast %c0_i32_72 : i32 to vector<1x256xi32>
    %194 = arith.cmpi sge, %192, %193 : vector<1x256xi32>
    %c1_i32_73 = arith.constant 1 : i32
    %195 = vector.broadcast %c1_i32_73 : i32 to vector<1x256xi32>
    %196 = arith.addi %7, %195 : vector<1x256xi32>
    %c16_i32_74 = arith.constant 16 : i32
    %197 = vector.broadcast %c16_i32_74 : i32 to vector<1x256xi32>
    %198 = arith.cmpi slt, %196, %197 : vector<1x256xi32>
    %199 = arith.andi %194, %198 : vector<1x256xi1>
    %c0_i32_75 = arith.constant 0 : i32
    %200 = vector.broadcast %c0_i32_75 : i32 to vector<1x256xi32>
    %201 = arith.addi %8, %200 : vector<1x256xi32>
    %c0_i32_76 = arith.constant 0 : i32
    %202 = vector.broadcast %c0_i32_76 : i32 to vector<1x256xi32>
    %203 = arith.cmpi sge, %201, %202 : vector<1x256xi32>
    %204 = arith.andi %199, %203 : vector<1x256xi1>
    %c0_i32_77 = arith.constant 0 : i32
    %205 = vector.broadcast %c0_i32_77 : i32 to vector<1x256xi32>
    %206 = arith.addi %8, %205 : vector<1x256xi32>
    %c16_i32_78 = arith.constant 16 : i32
    %207 = vector.broadcast %c16_i32_78 : i32 to vector<1x256xi32>
    %208 = arith.cmpi slt, %206, %207 : vector<1x256xi32>
    %209 = arith.andi %204, %208 : vector<1x256xi1>
    %210 = vector.extract_strided_slice %4 {offsets = [0, 7], sizes = [8, 1], strides = [1, 1]} : vector<8x9xf32> to vector<8x1xf32>
    %cst_79 = arith.constant 0.000000e+00 : f32
    %211 = vector.shape_cast %209 : vector<1x256xi1> to vector<1x256xi1>
    %212 = vector.broadcast %211 : vector<1x256xi1> to vector<8x256xi1>
    %213 = vector.shape_cast %210 : vector<8x1xf32> to vector<8x1xf32>
    %214 = vector.broadcast %213 : vector<8x1xf32> to vector<8x256xf32>
    %215 = vector.broadcast %cst_79 : f32 to vector<8x256xf32>
    %216 = arith.select %212, %214, %215 : vector<8x256xi1>, vector<8x256xf32>
    %c1_i32_80 = arith.constant 1 : i32
    %217 = vector.broadcast %c1_i32_80 : i32 to vector<1x256xi32>
    %218 = arith.addi %7, %217 : vector<1x256xi32>
    %c0_i32_81 = arith.constant 0 : i32
    %219 = vector.broadcast %c0_i32_81 : i32 to vector<1x256xi32>
    %220 = arith.cmpi sge, %218, %219 : vector<1x256xi32>
    %c1_i32_82 = arith.constant 1 : i32
    %221 = vector.broadcast %c1_i32_82 : i32 to vector<1x256xi32>
    %222 = arith.addi %7, %221 : vector<1x256xi32>
    %c16_i32_83 = arith.constant 16 : i32
    %223 = vector.broadcast %c16_i32_83 : i32 to vector<1x256xi32>
    %224 = arith.cmpi slt, %222, %223 : vector<1x256xi32>
    %225 = arith.andi %220, %224 : vector<1x256xi1>
    %c1_i32_84 = arith.constant 1 : i32
    %226 = vector.broadcast %c1_i32_84 : i32 to vector<1x256xi32>
    %227 = arith.addi %8, %226 : vector<1x256xi32>
    %c0_i32_85 = arith.constant 0 : i32
    %228 = vector.broadcast %c0_i32_85 : i32 to vector<1x256xi32>
    %229 = arith.cmpi sge, %227, %228 : vector<1x256xi32>
    %230 = arith.andi %225, %229 : vector<1x256xi1>
    %c1_i32_86 = arith.constant 1 : i32
    %231 = vector.broadcast %c1_i32_86 : i32 to vector<1x256xi32>
    %232 = arith.addi %8, %231 : vector<1x256xi32>
    %c16_i32_87 = arith.constant 16 : i32
    %233 = vector.broadcast %c16_i32_87 : i32 to vector<1x256xi32>
    %234 = arith.cmpi slt, %232, %233 : vector<1x256xi32>
    %235 = arith.andi %230, %234 : vector<1x256xi1>
    %236 = vector.extract_strided_slice %4 {offsets = [0, 8], sizes = [8, 1], strides = [1, 1]} : vector<8x9xf32> to vector<8x1xf32>
    %cst_88 = arith.constant 0.000000e+00 : f32
    %237 = vector.shape_cast %235 : vector<1x256xi1> to vector<1x256xi1>
    %238 = vector.broadcast %237 : vector<1x256xi1> to vector<8x256xi1>
    %239 = vector.shape_cast %236 : vector<8x1xf32> to vector<8x1xf32>
    %240 = vector.broadcast %239 : vector<8x1xf32> to vector<8x256xf32>
    %241 = vector.broadcast %cst_88 : f32 to vector<8x256xf32>
    %242 = arith.select %238, %240, %241 : vector<8x256xi1>, vector<8x256xf32>
    %c0_89 = arith.constant 0 : index
    %c0_90 = arith.constant 0 : index
    %c0_91 = arith.constant 0 : index
    %243 = vector.load %arg1[%c0_89, %c0_90, %c0_91] : memref<2x8x256xf32, #tpu.memory_space<vmem>>, vector<1x8x256xf32>
    %244 = vector.shape_cast %243 : vector<1x8x256xf32> to vector<8x256xf32>
    %cst_92 = arith.constant dense<0.000000e+00> : vector<16x256xf32>
    %245 = tpu.matmul %0, %244, %cst_92 {dimension_numbers = #tpu.dot_dimension_numbers<[1], [0], [0], [1], [0, 0, 1, 1], [], []>, precision = #tpu.contract_precision<fp32>} : vector<16x8xf32>, vector<8x256xf32>, vector<16x256xf32> -> vector<16x256xf32>
    %246 = vector.broadcast %1 : vector<16x1xf32> to vector<16x256xf32>
    %247 = arith.addf %245, %246 : vector<16x256xf32>
    %cst_93 = arith.constant 5.000000e-01 : f32
    %248 = vector.broadcast %cst_93 : f32 to vector<16x256xf32>
    %249 = arith.mulf %248, %247 : vector<16x256xf32>
    %cst_94 = arith.constant 0.797884583 : f32
    %250 = vector.broadcast %cst_94 : f32 to vector<16x256xf32>
    %251 = arith.mulf %250, %247 : vector<16x256xf32>
    %cst_95 = arith.constant 4.471500e-02 : f32
    %252 = vector.broadcast %cst_95 : f32 to vector<16x256xf32>
    %253 = arith.mulf %252, %247 : vector<16x256xf32>
    %254 = arith.mulf %253, %247 : vector<16x256xf32>
    %cst_96 = arith.constant 1.000000e+00 : f32
    %255 = vector.broadcast %cst_96 : f32 to vector<16x256xf32>
    %256 = arith.addf %255, %254 : vector<16x256xf32>
    %257 = arith.mulf %251, %256 : vector<16x256xf32>
    %258 = math.tanh %257 : vector<16x256xf32>
    %cst_97 = arith.constant 1.000000e+00 : f32
    %259 = vector.broadcast %cst_97 : f32 to vector<16x256xf32>
    %260 = arith.addf %259, %258 : vector<16x256xf32>
    %261 = arith.mulf %249, %260 : vector<16x256xf32>
    %262 = vector.extract_strided_slice %261 {offsets = [0, 0], sizes = [8, 256], strides = [1, 1]} : vector<16x256xf32> to vector<8x256xf32>
    %263 = vector.extract_strided_slice %261 {offsets = [8, 0], sizes = [8, 256], strides = [1, 1]} : vector<16x256xf32> to vector<8x256xf32>
    %c17_i32 = arith.constant 17 : i32
    %264 = tpu.dynamic_rotate %263 by %c17_i32 dim 1 : vector<8x256xf32>, i32 -> vector<8x256xf32>
    %265 = arith.mulf %34, %264 : vector<8x256xf32>
    %c16_i32_98 = arith.constant 16 : i32
    %266 = tpu.dynamic_rotate %263 by %c16_i32_98 dim 1 : vector<8x256xf32>, i32 -> vector<8x256xf32>
    %267 = arith.mulf %60, %266 : vector<8x256xf32>
    %268 = arith.addf %265, %267 : vector<8x256xf32>
    %c15_i32 = arith.constant 15 : i32
    %269 = tpu.dynamic_rotate %263 by %c15_i32 dim 1 : vector<8x256xf32>, i32 -> vector<8x256xf32>
    %270 = arith.mulf %86, %269 : vector<8x256xf32>
    %271 = arith.addf %268, %270 : vector<8x256xf32>
    %c1_i32_99 = arith.constant 1 : i32
    %272 = tpu.dynamic_rotate %263 by %c1_i32_99 dim 1 : vector<8x256xf32>, i32 -> vector<8x256xf32>
    %273 = arith.mulf %112, %272 : vector<8x256xf32>
    %274 = arith.addf %271, %273 : vector<8x256xf32>
    %275 = arith.mulf %138, %263 : vector<8x256xf32>
    %276 = arith.addf %274, %275 : vector<8x256xf32>
    %c255_i32 = arith.constant 255 : i32
    %277 = tpu.dynamic_rotate %263 by %c255_i32 dim 1 : vector<8x256xf32>, i32 -> vector<8x256xf32>
    %278 = arith.mulf %164, %277 : vector<8x256xf32>
    %279 = arith.addf %276, %278 : vector<8x256xf32>
    %c241_i32 = arith.constant 241 : i32
    %280 = tpu.dynamic_rotate %263 by %c241_i32 dim 1 : vector<8x256xf32>, i32 -> vector<8x256xf32>
    %281 = arith.mulf %190, %280 : vector<8x256xf32>
    %282 = arith.addf %279, %281 : vector<8x256xf32>
    %c240_i32 = arith.constant 240 : i32
    %283 = tpu.dynamic_rotate %263 by %c240_i32 dim 1 : vector<8x256xf32>, i32 -> vector<8x256xf32>
    %284 = arith.mulf %216, %283 : vector<8x256xf32>
    %285 = arith.addf %282, %284 : vector<8x256xf32>
    %c239_i32 = arith.constant 239 : i32
    %286 = tpu.dynamic_rotate %263 by %c239_i32 dim 1 : vector<8x256xf32>, i32 -> vector<8x256xf32>
    %287 = arith.mulf %242, %286 : vector<8x256xf32>
    %288 = arith.addf %285, %287 : vector<8x256xf32>
    %289 = vector.broadcast %5 : vector<8x1xf32> to vector<8x256xf32>
    %290 = arith.addf %288, %289 : vector<8x256xf32>
    %291 = arith.mulf %262, %290 : vector<8x256xf32>
    %cst_100 = arith.constant dense<0.000000e+00> : vector<8x256xf32>
    %292 = tpu.matmul %2, %291, %cst_100 {dimension_numbers = #tpu.dot_dimension_numbers<[1], [0], [0], [1], [0, 0, 1, 1], [], []>, precision = #tpu.contract_precision<fp32>} : vector<8x8xf32>, vector<8x256xf32>, vector<8x256xf32> -> vector<8x256xf32>
    %293 = vector.broadcast %3 : vector<8x1xf32> to vector<8x256xf32>
    %294 = arith.addf %292, %293 : vector<8x256xf32>
    %cst_101 = arith.constant 5.000000e-01 : f32
    %295 = vector.broadcast %cst_101 : f32 to vector<8x256xf32>
    %296 = arith.mulf %295, %294 : vector<8x256xf32>
    %cst_102 = arith.constant 0.797884583 : f32
    %297 = vector.broadcast %cst_102 : f32 to vector<8x256xf32>
    %298 = arith.mulf %297, %294 : vector<8x256xf32>
    %cst_103 = arith.constant 4.471500e-02 : f32
    %299 = vector.broadcast %cst_103 : f32 to vector<8x256xf32>
    %300 = arith.mulf %299, %294 : vector<8x256xf32>
    %301 = arith.mulf %300, %294 : vector<8x256xf32>
    %cst_104 = arith.constant 1.000000e+00 : f32
    %302 = vector.broadcast %cst_104 : f32 to vector<8x256xf32>
    %303 = arith.addf %302, %301 : vector<8x256xf32>
    %304 = arith.mulf %298, %303 : vector<8x256xf32>
    %305 = math.tanh %304 : vector<8x256xf32>
    %cst_105 = arith.constant 1.000000e+00 : f32
    %306 = vector.broadcast %cst_105 : f32 to vector<8x256xf32>
    %307 = arith.addf %306, %305 : vector<8x256xf32>
    %308 = arith.mulf %296, %307 : vector<8x256xf32>
    %c0_106 = arith.constant 0 : index
    %c0_107 = arith.constant 0 : index
    %c0_108 = arith.constant 0 : index
    %309 = vector.load %arg9[%c0_106, %c0_107, %c0_108] : memref<2x8x256xf32, #tpu.memory_space<vmem>>, vector<1x8x256xf32>
    %310 = vector.shape_cast %309 : vector<1x8x256xf32> to vector<8x256xf32>
    %311 = vector.shape_cast %308 : vector<8x256xf32> to vector<1x8x256xf32>
    tpu.vector_store %arg9[%c0_106, %c0_107, %c0_108], %311 {strides = array<i32>} : memref<2x8x256xf32, #tpu.memory_space<vmem>>, vector<1x8x256xf32>,
    %c1 = arith.constant 1 : index
    %c0_109 = arith.constant 0 : index
    %c0_110 = arith.constant 0 : index
    %312 = vector.load %arg1[%c1, %c0_109, %c0_110] : memref<2x8x256xf32, #tpu.memory_space<vmem>>, vector<1x8x256xf32>
    %313 = vector.shape_cast %312 : vector<1x8x256xf32> to vector<8x256xf32>
    %cst_111 = arith.constant dense<0.000000e+00> : vector<16x256xf32>
    %314 = tpu.matmul %0, %313, %cst_111 {dimension_numbers = #tpu.dot_dimension_numbers<[1], [0], [0], [1], [0, 0, 1, 1], [], []>, precision = #tpu.contract_precision<fp32>} : vector<16x8xf32>, vector<8x256xf32>, vector<16x256xf32> -> vector<16x256xf32>
    %315 = vector.broadcast %1 : vector<16x1xf32> to vector<16x256xf32>
    %316 = arith.addf %314, %315 : vector<16x256xf32>
    %cst_112 = arith.constant 5.000000e-01 : f32
    %317 = vector.broadcast %cst_112 : f32 to vector<16x256xf32>
    %318 = arith.mulf %317, %316 : vector<16x256xf32>
    %cst_113 = arith.constant 0.797884583 : f32
    %319 = vector.broadcast %cst_113 : f32 to vector<16x256xf32>
    %320 = arith.mulf %319, %316 : vector<16x256xf32>
    %cst_114 = arith.constant 4.471500e-02 : f32
    %321 = vector.broadcast %cst_114 : f32 to vector<16x256xf32>
    %322 = arith.mulf %321, %316 : vector<16x256xf32>
    %323 = arith.mulf %322, %316 : vector<16x256xf32>
    %cst_115 = arith.constant 1.000000e+00 : f32
    %324 = vector.broadcast %cst_115 : f32 to vector<16x256xf32>
    %325 = arith.addf %324, %323 : vector<16x256xf32>
    %326 = arith.mulf %320, %325 : vector<16x256xf32>
    %327 = math.tanh %326 : vector<16x256xf32>
    %cst_116 = arith.constant 1.000000e+00 : f32
    %328 = vector.broadcast %cst_116 : f32 to vector<16x256xf32>
    %329 = arith.addf %328, %327 : vector<16x256xf32>
    %330 = arith.mulf %318, %329 : vector<16x256xf32>
    %331 = vector.extract_strided_slice %330 {offsets = [0, 0], sizes = [8, 256], strides = [1, 1]} : vector<16x256xf32> to vector<8x256xf32>
    %332 = vector.extract_strided_slice %330 {offsets = [8, 0], sizes = [8, 256], strides = [1, 1]} : vector<16x256xf32> to vector<8x256xf32>
    %c17_i32_117 = arith.constant 17 : i32
    %333 = tpu.dynamic_rotate %332 by %c17_i32_117 dim 1 : vector<8x256xf32>, i32 -> vector<8x256xf32>
    %334 = arith.mulf %34, %333 : vector<8x256xf32>
    %c16_i32_118 = arith.constant 16 : i32
    %335 = tpu.dynamic_rotate %332 by %c16_i32_118 dim 1 : vector<8x256xf32>, i32 -> vector<8x256xf32>
    %336 = arith.mulf %60, %335 : vector<8x256xf32>
    %337 = arith.addf %334, %336 : vector<8x256xf32>
    %c15_i32_119 = arith.constant 15 : i32
    %338 = tpu.dynamic_rotate %332 by %c15_i32_119 dim 1 : vector<8x256xf32>, i32 -> vector<8x256xf32>
    %339 = arith.mulf %86, %338 : vector<8x256xf32>
    %340 = arith.addf %337, %339 : vector<8x256xf32>
    %c1_i32_120 = arith.constant 1 : i32
    %341 = tpu.dynamic_rotate %332 by %c1_i32_120 dim 1 : vector<8x256xf32>, i32 -> vector<8x256xf32>
    %342 = arith.mulf %112, %341 : vector<8x256xf32>
    %343 = arith.addf %340, %342 : vector<8x256xf32>
    %344 = arith.mulf %138, %332 : vector<8x256xf32>
    %345 = arith.addf %343, %344 : vector<8x256xf32>
    %c255_i32_121 = arith.constant 255 : i32
    %346 = tpu.dynamic_rotate %332 by %c255_i32_121 dim 1 : vector<8x256xf32>, i32 -> vector<8x256xf32>
    %347 = arith.mulf %164, %346 : vector<8x256xf32>
    %348 = arith.addf %345, %347 : vector<8x256xf32>
    %c241_i32_122 = arith.constant 241 : i32
    %349 = tpu.dynamic_rotate %332 by %c241_i32_122 dim 1 : vector<8x256xf32>, i32 -> vector<8x256xf32>
    %350 = arith.mulf %190, %349 : vector<8x256xf32>
    %351 = arith.addf %348, %350 : vector<8x256xf32>
    %c240_i32_123 = arith.constant 240 : i32
    %352 = tpu.dynamic_rotate %332 by %c240_i32_123 dim 1 : vector<8x256xf32>, i32 -> vector<8x256xf32>
    %353 = arith.mulf %216, %352 : vector<8x256xf32>
    %354 = arith.addf %351, %353 : vector<8x256xf32>
    %c239_i32_124 = arith.constant 239 : i32
    %355 = tpu.dynamic_rotate %332 by %c239_i32_124 dim 1 : vector<8x256xf32>, i32 -> vector<8x256xf32>
    %356 = arith.mulf %242, %355 : vector<8x256xf32>
    %357 = arith.addf %354, %356 : vector<8x256xf32>
    %358 = vector.broadcast %5 : vector<8x1xf32> to vector<8x256xf32>
    %359 = arith.addf %357, %358 : vector<8x256xf32>
    %360 = arith.mulf %331, %359 : vector<8x256xf32>
    %cst_125 = arith.constant dense<0.000000e+00> : vector<8x256xf32>
    %361 = tpu.matmul %2, %360, %cst_125 {dimension_numbers = #tpu.dot_dimension_numbers<[1], [0], [0], [1], [0, 0, 1, 1], [], []>, precision = #tpu.contract_precision<fp32>} : vector<8x8xf32>, vector<8x256xf32>, vector<8x256xf32> -> vector<8x256xf32>
    %362 = vector.broadcast %3 : vector<8x1xf32> to vector<8x256xf32>
    %363 = arith.addf %361, %362 : vector<8x256xf32>
    %cst_126 = arith.constant 5.000000e-01 : f32
    %364 = vector.broadcast %cst_126 : f32 to vector<8x256xf32>
    %365 = arith.mulf %364, %363 : vector<8x256xf32>
    %cst_127 = arith.constant 0.797884583 : f32
    %366 = vector.broadcast %cst_127 : f32 to vector<8x256xf32>
    %367 = arith.mulf %366, %363 : vector<8x256xf32>
    %cst_128 = arith.constant 4.471500e-02 : f32
    %368 = vector.broadcast %cst_128 : f32 to vector<8x256xf32>
    %369 = arith.mulf %368, %363 : vector<8x256xf32>
    %370 = arith.mulf %369, %363 : vector<8x256xf32>
    %cst_129 = arith.constant 1.000000e+00 : f32
    %371 = vector.broadcast %cst_129 : f32 to vector<8x256xf32>
    %372 = arith.addf %371, %370 : vector<8x256xf32>
    %373 = arith.mulf %367, %372 : vector<8x256xf32>
    %374 = math.tanh %373 : vector<8x256xf32>
    %cst_130 = arith.constant 1.000000e+00 : f32
    %375 = vector.broadcast %cst_130 : f32 to vector<8x256xf32>
    %376 = arith.addf %375, %374 : vector<8x256xf32>
    %377 = arith.mulf %365, %376 : vector<8x256xf32>
    %c1_131 = arith.constant 1 : index
    %c0_132 = arith.constant 0 : index
    %c0_133 = arith.constant 0 : index
    %378 = vector.load %arg9[%c1_131, %c0_132, %c0_133] : memref<2x8x256xf32, #tpu.memory_space<vmem>>, vector<1x8x256xf32>
    %379 = vector.shape_cast %378 : vector<1x8x256xf32> to vector<8x256xf32>
    %380 = vector.shape_cast %377 : vector<8x256xf32> to vector<1x8x256xf32>
    tpu.vector_store %arg9[%c1_131, %c0_132, %c0_133], %380 {strides = array<i32>} : memref<2x8x256xf32, #tpu.memory_space<vmem>>, vector<1x8x256xf32>,
    return
  }
  func.func @transform_0(%arg0: i32) -> (i32, i32, i32) {
    %c0_i32 = arith.constant 0 : i32
    %c0_i32_0 = arith.constant 0 : i32
    %c0_i32_1 = arith.constant 0 : i32
    return %arg0, %c0_i32, %c0_i32_0 : i32, i32, i32
  }
  func.func @transform_1(%arg0: i32) -> (i32, i32) {
    %c0_i32 = arith.constant 0 : i32
    %c0_i32_0 = arith.constant 0 : i32
    %c0_i32_1 = arith.constant 0 : i32
    return %c0_i32, %c0_i32_0 : i32, i32
  }
  func.func @transform_2(%arg0: i32) -> (i32, i32) {
    %c0_i32 = arith.constant 0 : i32
    %c0_i32_0 = arith.constant 0 : i32
    %c0_i32_1 = arith.constant 0 : i32
    return %c0_i32, %c0_i32_0 : i32, i32
  }
  func.func @transform_3(%arg0: i32) -> (i32, i32) {
    %c0_i32 = arith.constant 0 : i32
    %c0_i32_0 = arith.constant 0 : i32
    %c0_i32_1 = arith.constant 0 : i32
    return %c0_i32, %c0_i32_0 : i32, i32
  }
  func.func @transform_4(%arg0: i32) -> (i32, i32) {
    %c0_i32 = arith.constant 0 : i32
    %c0_i32_0 = arith.constant 0 : i32
    %c0_i32_1 = arith.constant 0 : i32
    return %c0_i32, %c0_i32_0 : i32, i32
  }
  func.func @transform_5(%arg0: i32) -> (i32, i32) {
    %c0_i32 = arith.constant 0 : i32
    %c0_i32_0 = arith.constant 0 : i32
    %c0_i32_1 = arith.constant 0 : i32
    return %c0_i32, %c0_i32_0 : i32, i32
  }
  func.func @transform_6(%arg0: i32) -> (i32, i32) {
    %c0_i32 = arith.constant 0 : i32
    %c0_i32_0 = arith.constant 0 : i32
    %c0_i32_1 = arith.constant 0 : i32
    return %c0_i32, %c0_i32_0 : i32, i32
  }
  func.func @transform_7(%arg0: i32) -> (i32, i32) {
    %c0_i32 = arith.constant 0 : i32
    %c0_i32_0 = arith.constant 0 : i32
    %c0_i32_1 = arith.constant 0 : i32
    return %c0_i32, %c0_i32_0 : i32, i32
  }
  func.func @transform_8(%arg0: i32) -> (i32, i32, i32) {
    %c0_i32 = arith.constant 0 : i32
    %c0_i32_0 = arith.constant 0 : i32
    %c0_i32_1 = arith.constant 0 : i32
    return %arg0, %c0_i32, %c0_i32_0 : i32, i32, i32
  }
}

</mosaic_0001>

<bundles_post_ra>
// kernel: gated_ffn_forward.1
= control target key start
LH: loop header
LB: loop body
LE: loop exit
PB: predicated region body
PF: predicated region fallthrough
CT: control target
= control target key end

     0   :  { %s3178_s27 = smov 0   ;;  %s3901_s0 = inlined_call_operand.vmem [shape: f32[4,8,256], index: 0, kind: input, shape index: {}]   ;;  %s3902_s1 = inlined_call_operand.vmem [shape: f32[16,8], index: 1, kind: input, shape index: {}]   ;;  %s3903_s2 = inlined_call_operand.vmem [shape: f32[16,1], index: 2, kind: input, shape index: {}]   ;;  %s3904_s3 = inlined_call_operand.vmem [shape: s32[2,256], index: 3, kind: input, shape index: {}]   ;;  %s3905_s4 = inlined_call_operand.vmem [shape: f32[8,9], index: 4, kind: input, shape index: {}]   ;;  %s3906_s5 = inlined_call_operand.vmem [shape: f32[8,1], index: 5, kind: input, shape index: {}]   ;;  %s3907_s6 = inlined_call_operand.vmem [shape: f32[8,8], index: 6, kind: input, shape index: {}]   ;;  %s3908_s7 = inlined_call_operand.vmem [shape: f32[8,1], index: 7, kind: input, shape index: {}]   ;;  %s3909_s8 = inlined_call_operand.vmem [shape: f32[4,8,256], index: 8, kind: output, shape index: {}]  }
   0x1 LB: > { %s2948_s28 = sadd.s32 4294967295, %s3113_s27   ;;  %p2952_p0 = scmp.ge.s32.totalorder %s3113_s27, 1  ;;  %s3113_s27 = sphi %s3178_s27, %s18_s27  }
   0x2   : > { %p264_p1 = scmp.lt.s32.totalorder %s3113_s27, 3 }
   0x4   : > { %p265_p2 = pnand %p2952_p0, %p264_p1 }
   0x5   : > { %s2953_s29 = sshll.u32 (!%p265_p2), %s2948_s28, 1  ;;  %v314_v0 = vld [vmem:[%s3902_s1] sm:$0xff] (!%p265_p2)  ;;  %vm3910_vm0 = vcmask (!%p265_p2), 64512   ;;  %v315_v1 = vld [vmem:[%s3902_s1 + $0x8] sm:$0xff] (!%p265_p2)  ;;  %v3115_v2 = vmov (!%p265_p2), 0.0   ;;  %v3116_v5 = vmov (!%p265_p2), 0  }
   0x6   : > { %268 = sbr.rel (%p265_p2) target bundleno = 1244 (0x4dc), region = 52  ;;  %p301_p3 = scmp.lt.s32.totalorder (!%p265_p2), %s2953_s29, 3  ;;  %687 = vmatprep.mubr.f32.mxu0 (!%p265_p2), %v3115_v2  ;;  %v616_v3 = vsel (!%p265_p2), %vm3910_vm0, %v314_v0, 0  ;;  %v619_v4 = vsel (!%p265_p2), %vm3910_vm0, %v315_v1, 0  ;;  %3071 = vset.pattern.permute.xlu0 (!%p265_p2), %v3116_v5  ;;  %v317_v6 = vld [vmem:[%s3903_s2 + $0x8] sm:$0xff] (!%p265_p2)  ;;  %v3202_v7 = vld [vmem:[%s3905_s4] sm:$0xff] (!%p265_p2) }
   0x7   : > { %v3204_v8 = vand.u32 (!%p265_p2), 4294901760, %v616_v3  ;;  %v3206_v9 = vand.u32 (!%p265_p2), 4294901760, %v619_v4  ;;  %611 = vperm.xlu0 (!%p265_p2), %3071, %v317_v6   ;;  %3072 = vset.pattern.permute.xlu1 (!%p265_p2), %v3116_v5  ;;  %v316_v10 = vld [vmem:[%s3903_s2] sm:$0xff] (!%p265_p2)  ;;  %v3117_v17 = vmov (!%p265_p2), 1   ;;  %v3118_v25 = vmov (!%p265_p2), 2   ;;  %s3125_s22 = smov (!%p265_p2), 15  }
   0x8   : > { %358 = vperm.xlu1 (!%p265_p2), %3072, %v3202_v7   ;;  %1346 = vmatprep.mubr.f32.mxu1 (!%p265_p2), %v3115_v2  ;;  %v3119_v29 = vmov (!%p265_p2), 3   ;;  %v3120_v34 = vmov (!%p265_p2), 4   ;;  %v3121_v35 = vmov (!%p265_p2), 5   ;;  %v3122_v36 = vmov (!%p265_p2), 6   ;;  %s3126_s23 = smov (!%p265_p2), 17   ;;  %s3127_s24 = smov (!%p265_p2), 1  }
   0x9   : > { %v3217_v11 = vsub.f32 (!%p265_p2), %v616_v3, %v3204_v8  ;;  %v3220_v12 = vsub.f32 (!%p265_p2), %v619_v4, %v3206_v9  ;;  %v3123_v37 = vmov (!%p265_p2), 8   ;;  %v3124_v38 = vmov (!%p265_p2), 7   ;;  %s3128_s25 = smov (!%p265_p2), 16   ;;  %s3129_s26 = smov (!%p265_p2), 127   ;;  %v321_v0 = vld [vmem:[%s3906_s5] sm:$0xff] (!%p265_p2) }
   0xa   : > { %s3130_s28 = smov (!%p265_p2), 113   ;;  %s3131_s30 = smov (!%p265_p2), 112   ;;  %v322_v6 = vld [vmem:[%s3904_s3] sm:$0xf] (!%p265_p2) }
   0xb   : > { %v3231_v13 = vand.u32 (!%p265_p2), 4294901760, %v3217_v11  ;;  %v3234_v14 = vand.u32 (!%p265_p2), 4294901760, %v3220_v12  ;;  %606 = vperm.xlu0 (!%p265_p2), %3071, %v316_v10   ;;  %s3132_s9 = smov (!%p265_p2), 111   ;;  %vm363_vm1 = vcmp.ge.s32.totalorder (!%p265_p2), %v322_v6, 0  ;;  %vm369_vm4 = vcmp.lt.s32.totalorder (!%p265_p2), %v322_v6, 16 }
   0xc   : > { %3073 = vset.pattern.permute.xlu1 (!%p265_p2), %v3117_v17  ;;  %vm3356_vm6 = vmand (!%p265_p2), %vm363_vm1, %vm369_vm4 }
   0xd   : > { %s3935_s29 = smov (!%p301_p3, %s2953_s29), 3  ;;  %v691_v20 = vsub.f32 %v3217_v11, %v3231_v13  ;;  %v702_v21 = vsub.f32 %v3220_v12, %v3234_v14  ;;  %395 = vperm.xlu1 %3073, %v3202_v7  }
   0xe   : > { %s2971_s18 = sshll.u32 %s3935_s29, 4 }
   0xf   : > { %s3228_s21 = scalar_lea.vmem %s3901_s0, %s2971_s18  ;;  %v3243_v23 = vand.u32 4294901760, %v691_v20  ;;  %3074 = vset.pattern.permute.xlu0 %v3118_v25  ;;  %v3247_v26 = vand.u32 4294901760, %v702_v21  ;;  %v400_v20 = vadd.s32 1, %v322_v6  ;;  %v370_v25 = vsel %vm369_vm4, 1, %v3116_v5 }
  0x10   : > { %v603_v15 = vld [vmem:[%s3228_s21 + $0x8] sm:$0xff]  ;;  %v602_v16 = vld [vmem:[%s3228_s21] sm:$0xff]  ;;  %433 = vperm.xlu0 %3074, %v3202_v7  }
  0x11   : > { %v621_v18 = vand.u32 4294901760, %v603_v15  ;;  %v623_v19 = vand.u32 4294901760, %v602_v16  ;;  %3075 = vset.pattern.permute.xlu1 %v3119_v29  ;;  %vm401_vm7 = vcmp.ge.s32.totalorder %v400_v20, 0  ;;  %vm407_vm11 = vcmp.lt.s32.totalorder %v400_v20, 16 }
  0x12   : > { %461 = vperm.xlu1 %3075, %v3202_v7  }
  0x13   : > { %622 = vmatprep.subr.mxu0 %v621_v18  ;;  %v717_v22 = vsub.f32 %v602_v16, %v623_v19  ;;  %v711_v24 = vsub.f32 %v603_v15, %v621_v18  ;;  %v364_v15 = vsel %vm363_vm1, 1, %v3116_v5 }
  0x14   : > { %624 = vmatpush1.msra.mxu0 %v623_v19  ;;  %3077 = vset.pattern.permute.xlu0 %v3121_v35  ;;  %v338_v35 = vlaneseq }
  0x15   : > { %693 = vmatmul.mubr.f32.vlgmr.msra.gmra.mrb[0].mxu0 %v3243_v23  ;;  %v712_v27 = vand.u32 4294901760, %v711_v24  ;;  %v718_v28 = vand.u32 4294901760, %v717_v22  ;;  %515 = vperm.xlu0 %3077, %v3202_v7  }
  0x16   : > { %698 = vmatprep.mubr.f32.mxu0 %v3115_v2  ;;  %3076 = vset.pattern.permute.xlu1 %v3120_v34  ;;  %v402_v34 = vsel %vm401_vm7, 1, %v3116_v5 }
  0x17   : > { %v713_v30 = vsub.f32 %v711_v24, %v712_v27  ;;  %v719_v31 = vsub.f32 %v717_v22, %v718_v28  ;;  %488 = vperm.xlu1 %3076, %v3202_v7  }
  0x19   : > { %704 = vmatmul.mubr.f32.gmra.mrb[2].mxu0 %v3247_v26  ;;  %v714_v32 = vand.u32 4294901760, %v713_v30  ;;  %v720_v33 = vand.u32 4294901760, %v719_v31  ;;  %3078 = vset.pattern.permute.xlu0 %v3122_v36 }
  0x1a   : > { %784 = vmatprep.mubr.f32.mxu0 %v3115_v2  ;;  %543 = vperm.xlu0 %3078, %v3202_v7  }
  0x1b   : > { %715 = vmatprep.subr.mxu0 %v714_v32  ;;  %3080 = vset.pattern.permute.xlu1 %v3123_v37 }
  0x1c   : > { %721 = vmatpush1.msra.mxu0 %v720_v33  ;;  %597 = vperm.xlu1 %3080, %v3202_v7   ;;  %v2962_v33 = vrot.slane %v370_v25, 9 }
  0x1d   : > { %786 = vmatmul.mubr.f32.vlgmr.msra.gmra.mrb[0].mxu0 %v3204_v8  ;;  %801 = vmatprep.subr.mxu0 %v711_v24 }
  0x1e   : > { %791 = vmatprep.mubr.f32.mxu0 %v3115_v2  ;;  %804 = vmatpush1.msra.mxu0 %v717_v22  ;;  %vm3394_vm15 = vcmp.ne.s32.totalorder %v2962_v33, 0 }
  0x1f   : > { %885 = vmatprep.subr.mxu0 %v621_v18  ;;  %3079 = vset.pattern.permute.xlu0 %v3124_v38 }
  0x20   : > { %570 = vperm.xlu0 %3079, %v3202_v7   ;;  %3081 = vset.pattern.permute.xlu1 %v3116_v5  ;;  %v323_v7 = vadd.s32 4294967295, %v322_v6 }
  0x21   : > { %793 = vmatmul.mubr.f32.gmra.mrb[2].mxu0 %v3206_v9 }
  0x22   : > { %867 = vmatprep.mubr.f32.mxu0 %v3115_v2  ;;  %vm324_vm2 = vcmp.ge.s32.totalorder %v323_v7, 0  ;;  %vm325_vm3 = vcmp.lt.s32.totalorder %v323_v7, 16 }
  0x23   : > { %v327_v17 = vsel %vm324_vm2, 1, %v3116_v5  ;;  %v332_v22 = vsel %vm325_vm3, 1, %v3116_v5  ;;  %vm3364_vm8 = vmand %vm324_vm2, %vm325_vm3 }
  0x24   : > { %3082 = vset.pattern.permute.xlu0 %v3116_v5  ;;  %v2959_v21 = vrot.slane %v327_v17, 9  ;;  %v2960_v29 = vrot.slane %v332_v22, 9 }
  0x25   : > { %870 = vmatmul.mubr.f32.vlgmr.msra.gmra.mrb[0].mxu0 %v3217_v11 }
  0x26   : > { %875 = vmatprep.mubr.f32.mxu0 %v3115_v2  ;;  %887 = vmatpush1.msra.mxu0 %v623_v19  ;;  %vm3368_vm9 = vcmp.ne.s32.totalorder %v2959_v21, 0  ;;  %vm3388_vm14 = vcmp.ne.s32.totalorder %v2960_v29, 0 }
  0x27   : > { %972 = vmatprep.subr.mxu0 %v712_v27  ;;  %vm331_vm13 = vmand %vm3364_vm8, %vm3368_vm9 }
  0x28   : > { %vm439_vm1 = vmand %vm3356_vm6, %vm3368_vm9 }
  0x29   : > { %878 = vmatmul.mubr.f32.gmra.mrb[2].mxu0 %v3220_v12  ;;  %vm336_vm3 = vmand %vm331_vm13, %vm3388_vm14 }
  0x2a   : > { %950 = vmatprep.mubr.f32.mxu0 %v3115_v2  ;;  %vm440_vm4 = vmand %vm439_vm1, %vm3388_vm14 }
  0x2d   : > { %954 = vmatmul.mubr.f32.vlgmr.msra.gmra.mrb[0].mxu0 %v3231_v13 }
  0x2e   : > { %959 = vmatprep.mubr.f32.mxu0 %v3115_v2  ;;  %976 = vmatpush1.msra.mxu0 %v718_v28 }
  0x2f   : > { %1055 = vmatprep.subr.mxu0 %v621_v18 }
  0x31   : > { %963 = vmatmul.mubr.f32.gmra.mrb[2].mxu0 %v3234_v14 }
  0x32   : > { %1039 = vmatprep.mubr.f32.mxu0 %v3115_v2 }
  0x35   : > { %1041 = vmatmul.mubr.f32.vlgmr.msra.gmra.mrb[0].mxu0 %v3204_v8 }
  0x36   : > { %1046 = vmatprep.mubr.f32.mxu0 %v3115_v2  ;;  %1057 = vmatpush1.msra.mxu0 %v623_v19  ;;  %v2961_v19 = vrot.slane %v364_v15, 9 }
  0x38   : > { %vm3351_vm5 = vcmp.ne.s32.totalorder %v2961_v19, 0 }
  0x39   : > { %1048 = vmatmul.mubr.f32.gmra.mrb[2].mxu0 %v3206_v9  ;;  %vm466_vm10 = vmand %vm3356_vm6, %vm3351_vm5 }
  0x3a   : > { %1120 = vmatprep.mubr.f32.mxu0 %v3115_v2  ;;  %vm368_vm12 = vmand %vm3364_vm8, %vm3351_vm5 }
  0x3b   : > { %vm374_vm2 = vmand %vm368_vm12, %vm3394_vm15 }
  0x3c   : > { %vm3420_vm0 = vmand %vm466_vm10, %vm3394_vm15 }
  0x3d   : > { %1122 = vmatmul.mubr.f32.vlgmr.msra.gmra.mrb[0].mxu0 %v3204_v8  ;;  %vm3443_vm10 = vmand %vm401_vm7, %vm407_vm11  ;;  %v468_v7 = vsel %vm3420_vm0, 1, %v3116_v5 }
  0x3e   : > { %1127 = vmatprep.mubr.f32.mxu0 %v3115_v2 }
  0x41   : > { %1129 = vmatmul.mubr.f32.gmra.mrb[2].mxu0 %v3206_v9 }
  0x42   : > { %2470 = vmatprep.mubr.f32.mxu0 %v3115_v2 }
  0x86   : > { %v3284_v41 = vpop.permute.xlu0 %611 }
  0x87   : > { %v3327_v1 = vpop.permute.xlu1 %358 }
  0x8a   : > { %v3340_v16 = vpop.permute.xlu0 %606 }
  0x8c   : > { %v3329_v3 = vpop.permute.xlu1 %395 }
  0x8f   : > { %v3348_v24 = vpop.permute.xlu0 %433 }
  0x91   : > { %v3331_v4 = vpop.permute.xlu1 %461 }
  0x94   : > { %v3382_v36 = vpop.permute.xlu0 %515 }
  0x96   : > { %v3336_v10 = vpop.permute.xlu1 %488 }
  0x9b   : > { %v3344_v18 = vpop.permute.xlu1 %597 }
 0x110   : > { %v3280_v39 = vpop.f32.mrb[0].mxu0 }
 0x111   : > { %v3282_v40 = vpop.f32.mrb[1].mxu0 }
 0x114   : > { %v1130_v42 = vpop.f32.mrb[2].mxu0 }
 0x115   : > { %v2975_v43 = vadd.f32 %v1130_v42, %v3284_v41  ;;  %v1132_v44 = vpop.f32.mrb[3].mxu0 }
 0x116   : > { %v2976_v45 = vadd.f32 %v1132_v44, %v3284_v41  ;;  %v408_v44 = vsel %vm407_vm11, 1, %v3116_v5 }
 0x117   : > { %v1145_v46 = vmul.f32 0.044715, %v2975_v43  ;;  %v1141_v50 = vmul.f32 0.7978846, %v2975_v43  ;;  %v1137_v57 = vmul.f32 0.5, %v2975_v43 }
 0x118   : > { %v1146_v47 = vmul.f32 0.044715, %v2976_v45  ;;  %v1142_v54 = vmul.f32 0.7978846, %v2976_v45  ;;  %v1138_v62 = vmul.f32 0.5, %v2976_v45 }
 0x119   : > { %v1149_v48 = vmul.f32 %v2975_v43, %v1145_v46  ;;  %v2963_v43 = vrot.slane %v402_v34, 9  ;;  %v2964_v46 = vrot.slane %v408_v44, 9 }
 0x11a   : > { %v1150_v49 = vmul.f32 %v2976_v45, %v1146_v47  ;;  %v339_v45 = vshrl.u32 %v338_v35, 7 }
 0x11b   : > { %v1153_v51 = vadd.f32 1.0, %v1149_v48  ;;  %vm3424_vm12 = vcmp.ne.s32.totalorder %v2963_v43, 0  ;;  %vm3447_vm1 = vcmp.ne.s32.totalorder %v2964_v46, 0  ;;  %v3490_v46 = vadd.f32 %v3282_v40, %v3340_v16 }
 0x11c   : > { %v1154_v52 = vadd.f32 1.0, %v1150_v49  ;;  %vm406_vm13 = vmand %vm3364_vm8, %vm3424_vm12 }
 0x11d   : > { %v1157_v53 = vmul.f32 %v1153_v51, %v1141_v50  ;;  %v3428_v50 = vpop.permute.xlu0 %543  ;;  %v375_v51 = vsel %vm374_vm2, 1, %v3116_v5  ;;  %vm521_vm8 = vmand %vm3443_vm10, %vm3368_vm9 }
 0x11e   : > { %v1158_v55 = vmul.f32 %v1154_v52, %v1142_v54  ;;  %v337_v52 = vsel %vm336_vm3, 1, %v3116_v5  ;;  %v3438_v54 = vsub.s32 2, %v339_v45  ;;  %vm412_vm7 = vmand %vm406_vm13, %vm3447_vm1 }
 0x11f   : > { %3083 = vtanh.f32 %v1157_v53  ;;  %v3436_v53 = vsub.s32 0, %v339_v45  ;;  %v413_v19 = vsel %vm412_vm7, 1, %v3116_v5  ;;  %vm522_vm9 = vmand %vm521_vm8, %vm3388_vm14  ;;  %v3486_v45 = vadd.f32 %v3280_v39, %v3340_v16 }
 0x120   : > { %3085 = vtanh.f32 %v1158_v55  ;;  %v441_v55 = vsel %vm440_vm4, 1, %v3116_v5  ;;  %v476_v29 = vrot.slane %v468_v7, %v3438_v54  ;;  %v421_v43 = vrot.slane %v413_v19, %v3438_v54  ;;  %vm493_vm0 = vmand %vm3356_vm6, %vm3424_vm12 }
 0x121   : > { %v445_v6 = vrot.slane %v441_v55, %v3436_v53  ;;  %v449_v15 = vrot.slane %v441_v55, %v3438_v54  ;;  %v3468_v17 = vpop.permute.xlu0 %570  ;;  %v472_v25 = vrot.slane %v468_v7, %v3436_v53  ;;  %v417_v37 = vrot.slane %v413_v19, %v3436_v53  ;;  %vm494_vm6 = vmand %vm493_vm0, %vm3447_vm1 }
 0x122   : > { %v523_v44 = vsel %vm522_vm9, 1, %v3116_v5  ;;  %v429_v28 = vrot.slane %v421_v43, %v3436_v53 }
 0x123   : > { %v453_v33 = vrot.slane %v445_v6, %v3436_v53  ;;  %v457_v34 = vrot.slane %v449_v15, %v3436_v53  ;;  %v527_v40 = vrot.slane %v523_v44, %v3436_v53  ;;  %v425_v55 = vrot.slane %v417_v37, %v3436_v53 }
 0x125   : > { %vm458_vm4 = vcmp.eq.s32.totalorder %v453_v33, 1  ;;  %vm459_vm13 = vcmp.eq.s32.totalorder %v457_v34, 1  ;;  %vm430_vm0 = vcmp.eq.s32.totalorder %v425_v55, 1 }
 0x126   : > { %v3572_v49 = vsel %vm430_vm0, %v3348_v24, 0.0  ;;  %vm3933_vm0 = vcmask 64512  }
 0x129   : > { %v3084_v56 = vpop.eup %3083 }
 0x12a   : > { %v1165_v58 = vadd.f32 1.0, %v3084_v56  ;;  %v3086_v60 = vpop.eup %3085 }
 0x12b   : > { %v1166_v61 = vadd.f32 1.0, %v3086_v60  ;;  %v379_v60 = vrot.slane %v375_v51, %v3436_v53 }
 0x12c   : > { %v3288_v59 = vmul.f32 %v1165_v58, %v1137_v57 }
 0x12d   : > { %v3298_v63 = vmul.f32 %v1166_v61, %v1138_v62  ;;  %v383_v61 = vrot.slane %v375_v51, %v3438_v54  ;;  %v341_v62 = vrot.slane %v337_v52, %v3436_v53  ;;  %v387_v21 = vrot.slane %v379_v60, %v3436_v53 }
 0x12e   : > { %1193 = vrot.lane.b32.xlu1 %v3288_v59, %s3125_s22  ;;  %1171 = vrot.lane.b32.xlu0 %v3288_v59, %s3126_s23  ;;  %v3497_v51 = vrot.slane %v472_v25, %v3436_v53  ;;  %v3508_v60 = vand.u32 127, %v338_v35  ;;  %v531_v35 = vrot.slane %v523_v44, %v3438_v54  ;;  %v3539_v25 = vrot.slane %v527_v40, %v3436_v53 }
 0x12f   : > { %v391_v22 = vrot.slane %v383_v61, %v3436_v53  ;;  %v349_v31 = vrot.slane %v341_v62, %v3436_v53  ;;  %vm392_vm11 = vcmp.eq.s32.totalorder %v387_v21, 1  ;;  %v1143_v61 = vmul.f32 0.044715, %v3486_v45 }
 0x130   : > { %v1144_v62 = vmul.f32 0.044715, %v3490_v46  ;;  %vm485_vm8 = vcmp.eq.s32.totalorder %v3497_v51, 1  ;;  %vm1186_vm7 = vcmp.lt.s32.totalorder %v3508_v60, 16  ;;  %v3531_v21 = vsel %vm458_vm4, %v3331_v4, 0.0  ;;  %vm575_vm4 = vmand %vm3443_vm10, %vm3424_vm12 }
 0x131   : > { %vm393_vm14 = vcmp.eq.s32.totalorder %v391_v22, 1  ;;  %vm354_vm2 = vcmp.eq.s32.totalorder %v349_v31, 1  ;;  %v495_v22 = vsel %vm494_vm6, 1, %v3116_v5  ;;  %v3553_v37 = vrot.slane %v531_v35, %v3436_v53  ;;  %vm548_vm12 = vmand %vm3443_vm10, %vm3351_vm5 }
 0x132   : > { %1204 = vrot.lane.b32.xlu1 %v3288_v59, %s3127_s24  ;;  %1182 = vrot.lane.b32.xlu0 %v3288_v59, %s3128_s25  ;;  %v3518_v6 = vsel %vm393_vm14, %v3329_v3, 0.0  ;;  %v3521_v15 = vsel %vm354_vm2, %v3327_v1, 0.0  ;;  %vm1177_vm14 = vcmp.lt.s32.totalorder %v3508_v60, 17  ;;  %vm1197_vm2 = vcmp.lt.s32.totalorder %v3508_v60, 15 }
 0x133   : > { %v1148_v31 = vmul.f32 %v3490_v46, %v1144_v62  ;;  %v499_v33 = vrot.slane %v495_v22, %v3436_v53  ;;  %v503_v34 = vrot.slane %v495_v22, %v3438_v54  ;;  %vm541_vm10 = vcmp.eq.s32.totalorder %v3553_v37, 1 }
 0x135   : > { %v1152_v22 = vadd.f32 1.0, %v1148_v31  ;;  %v1139_v31 = vmul.f32 0.7978846, %v3486_v45  ;;  %v511_v57 = vrot.slane %v503_v34, %v3436_v53 }
 0x136   : > { %1219 = vrot.lane.b32.xlu1 %v3288_v59, %s3129_s26  ;;  %1221 = vrot.lane.b32.xlu0 %v3298_v63, %s3129_s26 }
 0x137   : > { %vm513_vm6 = vcmp.eq.s32.totalorder %v511_v57, 1 }
 0x13a   : > { %1230 = vrot.lane.b32.xlu1 %v3288_v59, %s3130_s28  ;;  %1232 = vrot.lane.b32.xlu0 %v3298_v63, %s3130_s28 }
 0x13e   : > { %1173 = vrot.lane.b32.xlu1 %v3298_v63, %s3126_s23  ;;  %1243 = vrot.lane.b32.xlu0 %v3298_v63, %s3131_s30 }
 0x142   : > { %1184 = vrot.lane.b32.xlu1 %v3298_v63, %s3128_s25  ;;  %1252 = vrot.lane.b32.xlu0 %v3288_v59, %s3132_s9 }
 0x146   : > { %1195 = vrot.lane.b32.xlu1 %v3298_v63, %s3125_s22 }
 0x14a   : > { %1206 = vrot.lane.b32.xlu1 %v3298_v63, %s3127_s24 }
 0x14e   : > { %1241 = vrot.lane.b32.xlu1 %v3288_v59, %s3131_s30 }
 0x152   : > { %1265 = vperm.xlu1 %3081, %v321_v0   ;;  %v345_v0 = vrot.slane %v337_v52, %v3438_v54  ;;  %v3500_v52 = vrot.slane %v476_v29, %v3436_v53  ;;  %v1147_v29 = vmul.f32 %v3486_v45, %v1143_v61 }
 0x154   : > { %v353_v32 = vrot.slane %v345_v0, %v3436_v53  ;;  %v3514_v0 = vsel %vm392_vm11, %v3329_v3, 0.0  ;;  %v3535_v3 = vsel %vm459_vm13, %v3331_v4, 0.0  ;;  %vm486_vm9 = vcmp.eq.s32.totalorder %v3500_v52, 1  ;;  %vm3592_vm13 = vmand %vm575_vm4, %vm3447_vm1 }
 0x155   : > { %vm431_vm11 = vcmp.eq.s32.totalorder %v429_v28, 1  ;;  %v1151_v35 = vadd.f32 1.0, %v1147_v29  ;;  %vm549_vm1 = vmand %vm548_vm12, %vm3394_vm15  ;;  %v577_v42 = vsel %vm3592_vm13, 1, %v3116_v5  ;;  %vm540_vm15 = vcmp.eq.s32.totalorder %v3539_v25, 1 }
 0x156   : > { %1254 = vrot.lane.b32.xlu1 %v3298_v63, %s3132_s9  ;;  %vm355_vm3 = vcmp.eq.s32.totalorder %v353_v32, 1  ;;  %v3576_v62 = vsel %vm431_vm11, %v3348_v24, 0.0  ;;  %v550_v56 = vsel %vm549_vm1, 1, %v3116_v5  ;;  %v581_v5 = vrot.slane %v577_v42, %v3436_v53 }
 0x157   : > { %v3524_v19 = vsel %vm355_vm3, %v3327_v1, 0.0  ;;  %vm1208_vm3 = vcmp.lt.s32.totalorder %v3508_v60, 1  ;;  %v558_v55 = vrot.slane %v550_v56, %v3438_v54  ;;  %v3662_v57 = vsel %vm540_vm15, %v3428_v50, 0.0 }
 0x158   : > { %vm1245_vm11 = vcmp.lt.s32.totalorder %v3508_v60, 112 }
 0x1a0   : > { %v3360_v30 = vpop.permute.xlu1 %1193  ;;  %v1172_v39 = vpop.permute.xlu0 %1171 }
 0x1a4   : > { %v3392_v38 = vpop.permute.xlu1 %1204  ;;  %v1183_v1 = vpop.permute.xlu0 %1182 }
 0x1a8   : > { %v3411_v47 = vpop.permute.xlu1 %1219 }
 0x1ac   : > { %v3455_v58 = vpop.permute.xlu1 %1230 }
 0x1b0   : > { %v1174_v20 = vpop.permute.xlu1 %1173 }
 0x1b1   : > { %v1178_v44 = vsel %vm1177_vm14, %v1172_v39, %v1174_v20 }
 0x1b4   : > { %v1185_v48 = vpop.permute.xlu1 %1184 }
 0x1b5   : > { %v1187_v4 = vsel %vm1186_vm7, %v1183_v1, %v1185_v48  ;;  %v1188_v32 = vsel %vm1186_vm7, %v1185_v48, %v1183_v1  ;;  %v1179_v48 = vsel %vm1177_vm14, %v1174_v20, %v1172_v39 }
 0x1b6   : > { %v1189_v20 = vmul.f32 %v1188_v32, %v3514_v0  ;;  %v1190_v39 = vmul.f32 %v1187_v4, %v3518_v6  ;;  %v1180_v28 = vmul.f32 %v1179_v48, %v3521_v15  ;;  %v1140_v4 = vmul.f32 0.7978846, %v3490_v46  ;;  %v1222_v32 = vpop.permute.xlu0 %1221 }
 0x1b8   : > { %v1196_v7 = vpop.permute.xlu1 %1195  ;;  %v1156_v27 = vmul.f32 %v1152_v22, %v1140_v4  ;;  %v585_v22 = vrot.slane %v577_v42, %v3438_v54  ;;  %v589_v4 = vrot.slane %v581_v5, %v3436_v53 }
 0x1b9   : > { %v1198_v40 = vsel %vm1197_vm2, %v3360_v30, %v1196_v7  ;;  %v1199_v61 = vsel %vm1197_vm2, %v1196_v7, %v3360_v30  ;;  %v1181_v7 = vmul.f32 %v1178_v44, %v3524_v19 }
 0x1ba   : > { %v1200_v1 = vmul.f32 %v1199_v61, %v3572_v49  ;;  %v1201_v29 = vmul.f32 %v1198_v40, %v3576_v62  ;;  %v1155_v61 = vmul.f32 %v1151_v35, %v1139_v31  ;;  %vm594_vm4 = vcmp.eq.s32.totalorder %v589_v4, 1 }
 0x1bb   : > { %v1192_v44 = vadd.f32 %v1190_v39, %v1181_v7  ;;  %v3625_v39 = vsel %vm486_vm9, %v3336_v10, 0.0  ;;  %vm1234_vm9 = vcmp.lt.s32.totalorder %v3508_v60, 113 }
 0x1bc   : > { %v1207_v43 = vpop.permute.xlu1 %1206  ;;  %3087 = vtanh.f32 %v1155_v61 }
 0x1bd   : > { %v1209_v30 = vsel %vm1208_vm3, %v3392_v38, %v1207_v43  ;;  %v1210_v24 = vsel %vm1208_vm3, %v1207_v43, %v3392_v38  ;;  %v507_v38 = vrot.slane %v499_v33, %v3436_v53  ;;  %v1191_v43 = vadd.f32 %v1189_v20, %v1180_v28  ;;  %v1233_v28 = vpop.permute.xlu0 %1232 }
 0x1be   : > { %v1211_v48 = vmul.f32 %v1210_v24, %v3531_v21  ;;  %v1212_v40 = vmul.f32 %v1209_v30, %v3535_v3  ;;  %v3616_v33 = vsel %vm485_vm8, %v3336_v10, 0.0  ;;  %v1203_v20 = vadd.f32 %v1201_v29, %v1192_v44  ;;  %v318_v10 = vld [vmem:[%s3907_s6] sm:$0xff] }
 0x1bf   : > { %v1202_v34 = vadd.f32 %v1200_v1, %v1191_v43  ;;  %vm512_vm5 = vcmp.eq.s32.totalorder %v507_v38, 1  ;;  %vm1223_vm8 = vcmp.lt.s32.totalorder %v3508_v60, 127  ;;  %v554_v30 = vrot.slane %v550_v56, %v3436_v53 }
 0x1c0   : > { %v1214_v35 = vadd.f32 %v1212_v40, %v1203_v20  ;;  %3089 = vtanh.f32 %v1156_v27  ;;  %v1215_v52 = vmul.f32 %v3288_v59, %v3616_v33  ;;  %v1216_v24 = vmul.f32 %v3298_v63, %v3625_v39  ;;  %v1242_v44 = vpop.permute.xlu1 %1241 }
 0x1c1   : > { %v1213_v51 = vadd.f32 %v1211_v48, %v1202_v34  ;;  %v3643_v7 = vsel %vm512_vm5, %v3382_v36, 0.0  ;;  %v3646_v1 = vsel %vm513_vm6, %v3382_v36, 0.0  ;;  %v1224_v29 = vsel %vm1223_vm8, %v3411_v47, %v1222_v32 }
 0x1c2   : > { %v1225_v59 = vsel %vm1223_vm8, %v1222_v32, %v3411_v47  ;;  %v1218_v54 = vadd.f32 %v1216_v24, %v1214_v35  ;;  %v1278_v31 = vsel %vm3933_vm0, %v318_v10, 0  ;;  %v593_v38 = vrot.slane %v585_v22, %v3436_v53 }
 0x1c3   : > { %v1217_v63 = vadd.f32 %v1215_v52, %v1213_v51  ;;  %v562_v36 = vrot.slane %v554_v30, %v3436_v53  ;;  %v566_v43 = vrot.slane %v558_v55, %v3436_v53  ;;  %v1226_v47 = vmul.f32 %v1224_v29, %v3643_v7  ;;  %v1244_v53 = vpop.permute.xlu0 %1243 }
 0x1c4   : > { %v1227_v32 = vmul.f32 %v1225_v59, %v3646_v1  ;;  %v3670_v48 = vsel %vm541_vm10, %v3428_v50, 0.0  ;;  %v1235_v40 = vsel %vm1234_vm9, %v3455_v58, %v1233_v28  ;;  %v1236_v25 = vsel %vm1234_vm9, %v1233_v28, %v3455_v58 }
 0x1c5   : > { %v3678_v61 = vand.u32 4294901760, %v1278_v31  ;;  %v1228_v42 = vadd.f32 %v1226_v47, %v1217_v63  ;;  %vm567_vm12 = vcmp.eq.s32.totalorder %v562_v36, 1  ;;  %vm568_vm13 = vcmp.eq.s32.totalorder %v566_v43, 1 }
 0x1c6   : > { %v1229_v27 = vadd.f32 %v1227_v32, %v1218_v54  ;;  %v1237_v50 = vmul.f32 %v1235_v40, %v3662_v57  ;;  %v1238_v37 = vmul.f32 %v1236_v25, %v3670_v48  ;;  %v3088_v34 = vpop.eup %3087  ;;  %vm595_vm1 = vcmp.eq.s32.totalorder %v593_v38, 1 }
 0x1c7   : > { %v1246_v58 = vsel %vm1245_vm11, %v1242_v44, %v1244_v53  ;;  %v1247_v20 = vsel %vm1245_vm11, %v1244_v53, %v1242_v44  ;;  %v3690_v51 = vsub.f32 %v1278_v31, %v3678_v61  ;;  %vm1256_vm5 = vcmp.lt.s32.totalorder %v3508_v60, 111  ;;  %v1253_v28 = vpop.permute.xlu0 %1252 }
 0x1c8   : > { %v1239_v5 = vadd.f32 %v1237_v50, %v1228_v42  ;;  %v1240_v22 = vadd.f32 %v1238_v37, %v1229_v27  ;;  %v3694_v30 = vsel %vm594_vm4, %v3344_v18, 0.0  ;;  %v3697_v10 = vsel %vm567_vm12, %v3468_v17, 0.0 }
 0x1c9   : > { %v3700_v52 = vsel %vm568_vm13, %v3468_v17, 0.0  ;;  %v1163_v24 = vadd.f32 1.0, %v3088_v34  ;;  %v3703_v55 = vsel %vm595_vm1, %v3344_v18, 0.0  ;;  %v1248_v29 = vmul.f32 %v1246_v58, %v3697_v10 }
 0x1ca   : > { %v3090_v35 = vpop.eup %3089  ;;  %v1249_v59 = vmul.f32 %v1247_v20, %v3700_v52  ;;  %v3712_v17 = vand.u32 4294901760, %v3690_v51  ;;  %v1135_v47 = vmul.f32 0.5, %v3486_v45  ;;  %v1136_v32 = vmul.f32 0.5, %v3490_v46 }
 0x1cb   : > { %v1164_v54 = vadd.f32 1.0, %v3090_v35  ;;  %v1250_v38 = vadd.f32 %v1248_v29, %v1239_v5 }
 0x1cc   : > { %v1251_v36 = vadd.f32 %v1249_v59, %v1240_v22  ;;  %v1167_v25 = vmul.f32 %v1163_v24, %v1135_v47  ;;  %v1350_v50 = vsub.f32 %v3690_v51, %v3712_v17 }
 0x1cd   : > { %v1168_v53 = vmul.f32 %v1164_v54, %v1136_v32 }
 0x1ce   : > { %v3722_v35 = vand.u32 4294901760, %v1350_v50 }
 0x1d1   : > { %v3683_v56 = vpop.permute.xlu1 %1265 }
 0x1d5   : > { %v1255_v63 = vpop.permute.xlu1 %1254 }
 0x1d6   : > { %v1257_v31 = vsel %vm1256_vm5, %v1253_v28, %v1255_v63  ;;  %v1258_v4 = vsel %vm1256_vm5, %v1255_v63, %v1253_v28  ;;  %v2966_v63 = vld [vmem:[%s3228_s21 + $0x18] sm:$0xff] }
 0x1d7   : > { %v1259_v18 = vmul.f32 %v1257_v31, %v3694_v30  ;;  %v1260_v43 = vmul.f32 %v1258_v4, %v3703_v55  ;;  %v1768_v54 = vand.u32 4294901760, %v2966_v63  ;;  %v2965_v31 = vld [vmem:[%s3228_s21 + $0x10] sm:$0xff]  ;;  %s3889_s21 = scalar_lea.vmem %s3909_s8, %s2971_s18 }
 0x1d8   : > { %v1770_v4 = vand.u32 4294901760, %v2965_v31 }
 0x1d9   : > { %v1261_v44 = vadd.f32 %v1259_v18, %v1250_v38  ;;  %v1262_v40 = vadd.f32 %v1260_v43, %v1251_v36  ;;  %v1858_v38 = vsub.f32 %v2966_v63, %v1768_v54  ;;  %v319_v63 = vld [vmem:[%s3908_s7] sm:$0xff] }
 0x1da   : > { %v1864_v36 = vsub.f32 %v2965_v31, %v1770_v4 }
 0x1db   : > { %v1268_v42 = vadd.f32 %v3683_v56, %v1261_v44  ;;  %v1269_v27 = vadd.f32 %v3683_v56, %v1262_v40  ;;  %v1859_v18 = vand.u32 4294901760, %v1858_v38 }
 0x1dc   : > { %v1865_v43 = vand.u32 4294901760, %v1864_v36 }
 0x1dd   : > { %v1270_v37 = vmul.f32 %v1268_v42, %v1167_v25  ;;  %v1271_v34 = vmul.f32 %v1269_v27, %v1168_v53  ;;  %v1860_v47 = vsub.f32 %v1858_v38, %v1859_v18 }
 0x1de   : > { %v1866_v32 = vsub.f32 %v1864_v36, %v1865_v43 }
 0x1df   : > { %v1280_v58 = vand.u32 4294901760, %v1271_v34  ;;  %v1282_v20 = vand.u32 4294901760, %v1270_v37  ;;  %v1861_v44 = vand.u32 4294901760, %v1860_v47 }
 0x1e0   : > { %v1867_v40 = vand.u32 4294901760, %v1866_v32 }
 0x1e1   : > { %1281 = vmatprep.subr.mxu1 %v1280_v58  ;;  %v1359_v45 = vsub.f32 %v1271_v34, %v1280_v58  ;;  %v1365_v46 = vsub.f32 %v1270_v37, %v1282_v20 }
 0x1e2   : > { %1283 = vmatpush1.msra.mxu1 %v1282_v20 }
 0x1e3   : > { %1352 = vmatmul.mubr.f32.vlgmr.msra.gmra.mrb[0].mxu1 %v3722_v35  ;;  %v1360_v5 = vand.u32 4294901760, %v1359_v45  ;;  %v1366_v22 = vand.u32 4294901760, %v1365_v46 }
 0x1e4   : > { %1432 = vmatprep.mubr.f32.mxu1 %v3115_v2 }
 0x1e5   : > { %v1361_v24 = vsub.f32 %v1359_v45, %v1360_v5  ;;  %v1367_v28 = vsub.f32 %v1365_v46, %v1366_v22 }
 0x1e7   : > { %v1362_v29 = vand.u32 4294901760, %v1361_v24  ;;  %v1368_v59 = vand.u32 4294901760, %v1367_v28 }
 0x1e9   : > { %1363 = vmatprep.subr.mxu1 %v1362_v29 }
 0x1ea   : > { %1369 = vmatpush1.msra.mxu1 %v1368_v59 }
 0x1eb   : > { %1434 = vmatmul.mubr.f32.vlgmr.msra.gmra.mrb[0].mxu1 %v3678_v61  ;;  %1442 = vmatprep.subr.mxu1 %v1359_v45 }
 0x1ec   : > { %1445 = vmatpush1.msra.mxu1 %v1365_v46  ;;  %1508 = vmatprep.mubr.f32.mxu1 %v3115_v2 }
 0x1ed   : > { %1518 = vmatprep.subr.mxu1 %v1280_v58 }
 0x1f3   : > { %1511 = vmatmul.mubr.f32.vlgmr.msra.gmra.mrb[0].mxu1 %v3690_v51 }
 0x1f4   : > { %1520 = vmatpush1.msra.mxu1 %v1282_v20  ;;  %1583 = vmatprep.mubr.f32.mxu1 %v3115_v2 }
 0x1f5   : > { %1596 = vmatprep.subr.mxu1 %v1360_v5 }
 0x1fb   : > { %1587 = vmatmul.mubr.f32.vlgmr.msra.gmra.mrb[0].mxu1 %v3712_v17 }
 0x1fc   : > { %1600 = vmatpush1.msra.mxu1 %v1366_v22  ;;  %1663 = vmatprep.mubr.f32.mxu1 %v3115_v2 }
 0x1fd   : > { %1672 = vmatprep.subr.mxu1 %v1280_v58 }
 0x203   : > { %1665 = vmatmul.mubr.f32.vlgmr.msra.gmra.mrb[0].mxu1 %v3678_v61 }
 0x204   : > { %1674 = vmatpush1.msra.mxu1 %v1282_v20  ;;  %1737 = vmatprep.mubr.f32.mxu1 %v3115_v2 }
 0x205   : > { %1769 = vmatprep.subr.mxu1 %v1768_v54 }
 0x20b   : > { %1739 = vmatmul.mubr.f32.vlgmr.msra.gmra.mrb[0].mxu1 %v3678_v61 }
 0x20c   : > { %1771 = vmatpush1.msra.mxu1 %v1770_v4  ;;  %1834 = vmatprep.mubr.f32.mxu1 %v3115_v2 }
 0x20d   : > { %1862 = vmatprep.subr.mxu1 %v1861_v44 }
 0x20f   : > { %1840 = vmatmul.mubr.f32.vlgmr.msra.gmra.mrb[2].mxu1 %v3243_v23 }
 0x210   : > { %1845 = vmatprep.mubr.f32.mxu1 %v3115_v2  ;;  %1868 = vmatpush1.msra.mxu1 %v1867_v40 }
 0x211   : > { %1948 = vmatprep.subr.mxu1 %v1858_v38 }
 0x213   : > { %1851 = vmatmul.mubr.f32.gmra.mrb[4].mxu1 %v3247_v26 }
 0x214   : > { %1931 = vmatprep.mubr.f32.mxu1 %v3115_v2 }
 0x217   : > { %1933 = vmatmul.mubr.f32.vlgmr.msra.gmra.mrb[2].mxu1 %v3204_v8 }
 0x218   : > { %1938 = vmatprep.mubr.f32.mxu1 %v3115_v2  ;;  %1951 = vmatpush1.msra.mxu1 %v1864_v36 }
 0x219   : > { %2032 = vmatprep.subr.mxu1 %v1768_v54 }
 0x21b   : > { %1940 = vmatmul.mubr.f32.gmra.mrb[4].mxu1 %v3206_v9 }
 0x21c   : > { %2014 = vmatprep.mubr.f32.mxu1 %v3115_v2 }
 0x21f   : > { %2017 = vmatmul.mubr.f32.vlgmr.msra.gmra.mrb[2].mxu1 %v3217_v11 }
 0x220   : > { %2022 = vmatprep.mubr.f32.mxu1 %v3115_v2  ;;  %2034 = vmatpush1.msra.mxu1 %v1770_v4 }
 0x221   : > { %2119 = vmatprep.subr.mxu1 %v1859_v18 }
 0x223   : > { %2025 = vmatmul.mubr.f32.gmra.mrb[4].mxu1 %v3220_v12 }
 0x224   : > { %2097 = vmatprep.mubr.f32.mxu1 %v3115_v2 }
 0x227   : > { %2101 = vmatmul.mubr.f32.vlgmr.msra.gmra.mrb[2].mxu1 %v3231_v13 }
 0x228   : > { %2106 = vmatprep.mubr.f32.mxu1 %v3115_v2  ;;  %2123 = vmatpush1.msra.mxu1 %v1865_v43 }
 0x229   : > { %2202 = vmatprep.subr.mxu1 %v1768_v54 }
 0x22b   : > { %2110 = vmatmul.mubr.f32.gmra.mrb[4].mxu1 %v3234_v14 }
 0x22c   : > { %2186 = vmatprep.mubr.f32.mxu1 %v3115_v2 }
 0x22f   : > { %2188 = vmatmul.mubr.f32.vlgmr.msra.gmra.mrb[2].mxu1 %v3204_v8 }
 0x230   : > { %2193 = vmatprep.mubr.f32.mxu1 %v3115_v2  ;;  %2204 = vmatpush1.msra.mxu1 %v1770_v4 }
 0x233   : > { %2195 = vmatmul.mubr.f32.gmra.mrb[4].mxu1 %v3206_v9 }
 0x234   : > { %2267 = vmatprep.mubr.f32.mxu1 %v3115_v2 }
 0x237   : > { %2269 = vmatmul.mubr.f32.vlgmr.msra.gmra.mrb[2].mxu1 %v3204_v8 }
 0x238   : > { %2274 = vmatprep.mubr.f32.mxu1 %v3115_v2 }
 0x23b   : > { %2276 = vmatmul.mubr.f32.gmra.mrb[4].mxu1 %v3206_v9 }
 0x2de   : > { %v3761_v11 = vpop.f32.mrb[0].mxu1 }
 0x2df   : > { %v3763_v12 = vpop.f32.mrb[1].mxu1 }
 0x30a   : > { %v2270_v13 = vpop.f32.mrb[2].mxu1 }
 0x30b   : > { %v2272_v14 = vpop.f32.mrb[3].mxu1  ;;  %v3807_v54 = vadd.f32 %v2270_v13, %v3340_v16 }
 0x30c   : > { %v3810_v31 = vadd.f32 %v2272_v14, %v3340_v16 }
 0x30d   : > { %v2290_v4 = vmul.f32 0.044715, %v3807_v54 }
 0x30e   : > { %v2277_v23 = vpop.f32.mrb[4].mxu1  ;;  %v2291_v38 = vmul.f32 0.044715, %v3810_v31 }
 0x30f   : > { %v2981_v26 = vadd.f32 %v2277_v23, %v3284_v41  ;;  %v2279_v25 = vpop.f32.mrb[5].mxu1  ;;  %v2294_v43 = vmul.f32 %v3807_v54, %v2290_v4 }
 0x310   : > { %v2982_v53 = vadd.f32 %v2279_v25, %v3284_v41  ;;  %v2295_v47 = vmul.f32 %v3810_v31, %v2291_v38  ;;  %v2287_v25 = vmul.f32 0.7978846, %v3810_v31 }
 0x311   : > { %v2292_v42 = vmul.f32 0.044715, %v2981_v26  ;;  %v2288_v37 = vmul.f32 0.7978846, %v2981_v26  ;;  %v2284_v22 = vmul.f32 0.5, %v2981_v26  ;;  %v2298_v40 = vadd.f32 1.0, %v2294_v43 }
 0x312   : > { %v2293_v27 = vmul.f32 0.044715, %v2982_v53  ;;  %v2289_v58 = vmul.f32 0.7978846, %v2982_v53  ;;  %v2285_v28 = vmul.f32 0.5, %v2982_v53  ;;  %v2299_v23 = vadd.f32 1.0, %v2295_v47 }
 0x313   : > { %v2296_v50 = vmul.f32 %v2981_v26, %v2292_v42  ;;  %v2286_v26 = vmul.f32 0.7978846, %v3807_v54 }
 0x314   : > { %v2297_v8 = vmul.f32 %v2982_v53, %v2293_v27 }
 0x315   : > { %v2300_v34 = vadd.f32 1.0, %v2296_v50 }
 0x316   : > { %v2301_v9 = vadd.f32 1.0, %v2297_v8 }
 0x317   : > { %v2304_v20 = vmul.f32 %v2300_v34, %v2288_v37 }
 0x318   : > { %v2305_v45 = vmul.f32 %v2301_v9, %v2289_v58  ;;  %v2302_v58 = vmul.f32 %v2298_v40, %v2286_v26  ;;  %v2303_v9 = vmul.f32 %v2299_v23, %v2287_v25 }
 0x319   : > { %3091 = vtanh.f32 %v2304_v20 }
 0x31a   : > { %3093 = vtanh.f32 %v2305_v45 }
 0x31b   : > { %3095 = vtanh.f32 %v2302_v58 }
 0x31c   : > { %3097 = vtanh.f32 %v2303_v9 }
 0x323   : > { %v3092_v46 = vpop.eup %3091 }
 0x324   : > { %v3094_v5 = vpop.eup %3093  ;;  %v2312_v24 = vadd.f32 1.0, %v3092_v46 }
 0x325   : > { %v2313_v29 = vadd.f32 1.0, %v3094_v5 }
 0x326   : > { %v3767_v59 = vmul.f32 %v2312_v24, %v2284_v22 }
 0x327   : > { %v3769_v41 = vmul.f32 %v2313_v29, %v2285_v28 }
 0x328   : > { %2318 = vrot.lane.b32.xlu0 %v3767_v59, %s3126_s23 }
 0x329   : > { %2320 = vrot.lane.b32.xlu1 %v3769_v41, %s3126_s23 }
 0x32c   : > { %2326 = vrot.lane.b32.xlu0 %v3767_v59, %s3128_s25 }
 0x32d   : > { %2328 = vrot.lane.b32.xlu1 %v3769_v41, %s3128_s25 }
 0x330   : > { %2336 = vrot.lane.b32.xlu0 %v3767_v59, %s3125_s22 }
 0x331   : > { %2338 = vrot.lane.b32.xlu1 %v3769_v41, %s3125_s22 }
 0x334   : > { %2346 = vrot.lane.b32.xlu0 %v3767_v59, %s3127_s24 }
 0x335   : > { %2348 = vrot.lane.b32.xlu1 %v3769_v41, %s3127_s24 }
 0x338   : > { %2360 = vrot.lane.b32.xlu0 %v3767_v59, %s3129_s26 }
 0x339   : > { %2362 = vrot.lane.b32.xlu1 %v3769_v41, %s3129_s26 }
 0x33c   : > { %2370 = vrot.lane.b32.xlu0 %v3767_v59, %s3130_s28 }
 0x33d   : > { %2372 = vrot.lane.b32.xlu1 %v3769_v41, %s3130_s28 }
 0x340   : > { %2380 = vrot.lane.b32.xlu0 %v3767_v59, %s3131_s30 }
 0x341   : > { %2382 = vrot.lane.b32.xlu1 %v3769_v41, %s3131_s30 }
 0x344   : > { %2390 = vrot.lane.b32.xlu0 %v3767_v59, %s3132_s9 }
 0x345   : > { %2392 = vrot.lane.b32.xlu1 %v3769_v41, %s3132_s9 }
 0x348   : > { %1274 = vperm.xlu0 %3082, %v319_v63  }
 0x39a   : > { %v2319_v36 = vpop.permute.xlu0 %2318 }
 0x39b   : > { %v2321_v18 = vpop.permute.xlu1 %2320 }
 0x39c   : > { %v2322_v42 = vsel %vm1177_vm14, %v2319_v36, %v2321_v18  ;;  %v2323_v27 = vsel %vm1177_vm14, %v2321_v18, %v2319_v36 }
 0x39d   : > { %v2324_v45 = vmul.f32 %v2323_v27, %v3521_v15  ;;  %v2325_v46 = vmul.f32 %v2322_v42, %v3524_v19 }
 0x39e   : > { %v2327_v32 = vpop.permute.xlu0 %2326 }
 0x39f   : > { %v2329_v44 = vpop.permute.xlu1 %2328 }
 0x3a0   : > { %v2330_v13 = vsel %vm1186_vm7, %v2327_v32, %v2329_v44  ;;  %v2331_v16 = vsel %vm1186_vm7, %v2329_v44, %v2327_v32 }
 0x3a1   : > { %v2332_v37 = vmul.f32 %v2331_v16, %v3514_v0  ;;  %v2333_v34 = vmul.f32 %v2330_v13, %v3518_v6 }
 0x3a2   : > { %v2337_v14 = vpop.permute.xlu0 %2336 }
 0x3a3   : > { %v2339_v53 = vpop.permute.xlu1 %2338  ;;  %v2334_v29 = vadd.f32 %v2332_v37, %v2324_v45  ;;  %v2335_v6 = vadd.f32 %v2333_v34, %v2325_v46 }
 0x3a4   : > { %v2340_v50 = vsel %vm1197_vm2, %v2337_v14, %v2339_v53  ;;  %v2341_v8 = vsel %vm1197_vm2, %v2339_v53, %v2337_v14 }
 0x3a5   : > { %v2342_v5 = vmul.f32 %v2341_v8, %v3572_v49  ;;  %v2343_v22 = vmul.f32 %v2340_v50, %v3576_v62 }
 0x3a6   : > { %v2347_v20 = vpop.permute.xlu0 %2346 }
 0x3a7   : > { %v2349_v24 = vpop.permute.xlu1 %2348  ;;  %v2344_v19 = vadd.f32 %v2342_v5, %v2334_v29  ;;  %v2345_v49 = vadd.f32 %v2343_v22, %v2335_v6  ;;  %v2283_v22 = vmul.f32 0.5, %v3810_v31 }
 0x3a8   : > { %v2350_v28 = vsel %vm1208_vm3, %v2347_v20, %v2349_v24  ;;  %v2351_v0 = vsel %vm1208_vm3, %v2349_v24, %v2347_v20 }
 0x3a9   : > { %v2352_v63 = vmul.f32 %v2351_v0, %v3531_v21  ;;  %v2353_v4 = vmul.f32 %v2350_v28, %v3535_v3  ;;  %v2356_v21 = vmul.f32 %v3767_v59, %v3616_v33  ;;  %v2357_v3 = vmul.f32 %v3769_v41, %v3625_v39  ;;  %v3096_v39 = vpop.eup %3095 }
 0x3aa   : > { %v2361_v15 = vpop.permute.xlu0 %2360  ;;  %v3098_v42 = vpop.eup %3097 }
 0x3ab   : > { %v2363_v38 = vpop.permute.xlu1 %2362  ;;  %v2354_v62 = vadd.f32 %v2352_v63, %v2344_v19  ;;  %v2355_v36 = vadd.f32 %v2353_v4, %v2345_v49  ;;  %v2311_v58 = vadd.f32 1.0, %v3098_v42 }
 0x3ac   : > { %v2364_v18 = vsel %vm1223_vm8, %v2361_v15, %v2363_v38  ;;  %v2365_v43 = vsel %vm1223_vm8, %v2363_v38, %v2361_v15 }
 0x3ad   : > { %v2358_v23 = vadd.f32 %v2356_v21, %v2354_v62  ;;  %v2359_v13 = vadd.f32 %v2357_v3, %v2355_v36  ;;  %v2366_v16 = vmul.f32 %v2364_v18, %v3643_v7  ;;  %v2367_v14 = vmul.f32 %v2365_v43, %v3646_v1 }
 0x3ae   : > { %v2371_v47 = vpop.permute.xlu0 %2370  ;;  %v2315_v29 = vmul.f32 %v2311_v58, %v2283_v22 }
 0x3af   : > { %v2373_v32 = vpop.permute.xlu1 %2372  ;;  %v2368_v27 = vadd.f32 %v2366_v16, %v2358_v23  ;;  %v2369_v50 = vadd.f32 %v2367_v14, %v2359_v13 }
 0x3b0   : > { %v2374_v44 = vsel %vm1234_vm9, %v2371_v47, %v2373_v32  ;;  %v2375_v40 = vsel %vm1234_vm9, %v2373_v32, %v2371_v47 }
 0x3b1   : > { %v2376_v25 = vmul.f32 %v2374_v44, %v3662_v57  ;;  %v2377_v33 = vmul.f32 %v2375_v40, %v3670_v48  ;;  %v2310_v48 = vadd.f32 1.0, %v3096_v39 }
 0x3b2   : > { %v2381_v26 = vpop.permute.xlu0 %2380 }
 0x3b3   : > { %v2383_v59 = vpop.permute.xlu1 %2382  ;;  %v2378_v37 = vadd.f32 %v2376_v25, %v2368_v27  ;;  %v2379_v57 = vadd.f32 %v2377_v33, %v2369_v50 }
 0x3b4   : > { %v2384_v41 = vsel %vm1245_vm11, %v2381_v26, %v2383_v59  ;;  %v2385_v53 = vsel %vm1245_vm11, %v2383_v59, %v2381_v26 }
 0x3b5   : > { %v2386_v7 = vmul.f32 %v2384_v41, %v3697_v10  ;;  %v2387_v1 = vmul.f32 %v2385_v53, %v3700_v52  ;;  %v2282_v52 = vmul.f32 0.5, %v3807_v54 }
 0x3b6   : > { %v2391_v8 = vpop.permute.xlu0 %2390 }
 0x3b7   : > { %v2393_v34 = vpop.permute.xlu1 %2392  ;;  %v2388_v45 = vadd.f32 %v2386_v7, %v2378_v37  ;;  %v2389_v46 = vadd.f32 %v2387_v1, %v2379_v57  ;;  %v2314_v0 = vmul.f32 %v2310_v48, %v2282_v52 }
 0x3b8   : > { %v2394_v9 = vsel %vm1256_vm5, %v2391_v8, %v2393_v34  ;;  %v2395_v20 = vsel %vm1256_vm5, %v2393_v34, %v2391_v8 }
 0x3b9   : > { %v2396_v5 = vmul.f32 %v2394_v9, %v3694_v30  ;;  %v2397_v10 = vmul.f32 %v2395_v20, %v3703_v55 }
 0x3bb   : > { %v2398_v24 = vadd.f32 %v2396_v5, %v2388_v45  ;;  %v2399_v28 = vadd.f32 %v2397_v10, %v2389_v46 }
 0x3bd   : > { %v2400_v6 = vadd.f32 %v2398_v24, %v3683_v56  ;;  %v2401_v63 = vadd.f32 %v2399_v28, %v3683_v56 }
 0x3bf   : > { %v2402_v60 = vmul.f32 %v2400_v6, %v2314_v0  ;;  %v2403_v4 = vmul.f32 %v2401_v63, %v2315_v29 }
 0x3c1   : > { %v2404_v15 = vand.u32 4294901760, %v2403_v4  ;;  %v2406_v19 = vand.u32 4294901760, %v2402_v60 }
 0x3c3   : > { %2405 = vmatprep.subr.mxu0 %v2404_v15  ;;  %v2483_v30 = vsub.f32 %v2403_v4, %v2404_v15  ;;  %v2489_v49 = vsub.f32 %v2402_v60, %v2406_v19 }
 0x3c4   : > { %2407 = vmatpush1.msra.mxu0 %v2406_v19 }
 0x3c5   : > { %2476 = vmatmul.mubr.f32.vlgmr.msra.gmra.mrb[4].mxu0 %v3722_v35  ;;  %v2484_v55 = vand.u32 4294901760, %v2483_v30  ;;  %v2490_v54 = vand.u32 4294901760, %v2489_v49 }
 0x3c6   : > { %2556 = vmatprep.mubr.f32.mxu0 %v3115_v2 }
 0x3c7   : > { %v1275_v31 = vpop.permute.xlu0 %1274  ;;  %v2485_v38 = vsub.f32 %v2483_v30, %v2484_v55  ;;  %v2491_v62 = vsub.f32 %v2489_v49, %v2490_v54 }
 0x3c8   : > { %v2977_v36 = vadd.f32 %v3761_v11, %v1275_v31  ;;  %v2978_v56 = vadd.f32 %v3763_v12, %v1275_v31 }
 0x3c9   : > { %v2486_v18 = vand.u32 4294901760, %v2485_v38  ;;  %v2492_v43 = vand.u32 4294901760, %v2491_v62 }
 0x3ca   : > { %v1749_v47 = vmul.f32 0.044715, %v2977_v36  ;;  %v1750_v21 = vmul.f32 0.044715, %v2978_v56  ;;  %v1747_v35 = vmul.f32 0.7978846, %v2977_v36 }
 0x3cb   : > { %2487 = vmatprep.subr.mxu0 %v2486_v18  ;;  %v1748_v44 = vmul.f32 0.7978846, %v2978_v56  ;;  %v1745_v14 = vmul.f32 0.5, %v2977_v36 }
 0x3cc   : > { %2493 = vmatpush1.msra.mxu0 %v2492_v43  ;;  %v1751_v3 = vmul.f32 %v2977_v36, %v1749_v47  ;;  %v1752_v32 = vmul.f32 %v2978_v56, %v1750_v21 }
 0x3cd   : > { %2558 = vmatmul.mubr.f32.vlgmr.msra.gmra.mrb[4].mxu0 %v3678_v61  ;;  %2566 = vmatprep.subr.mxu0 %v2483_v30 }
 0x3ce   : > { %2569 = vmatpush1.msra.mxu0 %v2489_v49  ;;  %2632 = vmatprep.mubr.f32.mxu0 %v3115_v2  ;;  %v1753_v40 = vadd.f32 1.0, %v1751_v3  ;;  %v1754_v11 = vadd.f32 1.0, %v1752_v32 }
 0x3cf   : > { %2642 = vmatprep.subr.mxu0 %v2404_v15 }
 0x3d0   : > { %v1755_v12 = vmul.f32 %v1753_v40, %v1747_v35  ;;  %v1756_v23 = vmul.f32 %v1754_v11, %v1748_v44 }
 0x3d2   : > { %3099 = vtanh.f32 %v1755_v12 }
 0x3d3   : > { %3101 = vtanh.f32 %v1756_v23 }
 0x3d5   : > { %2635 = vmatmul.mubr.f32.vlgmr.msra.gmra.mrb[4].mxu0 %v3690_v51  ;;  %v1746_v51 = vmul.f32 0.5, %v2978_v56 }
 0x3d6   : > { %2644 = vmatpush1.msra.mxu0 %v2406_v19  ;;  %2707 = vmatprep.mubr.f32.mxu0 %v3115_v2 }
 0x3d7   : > { %2720 = vmatprep.subr.mxu0 %v2484_v55 }
 0x3dc   : > { %v3100_v13 = vpop.eup %3099 }
 0x3dd   : > { %2711 = vmatmul.mubr.f32.vlgmr.msra.gmra.mrb[4].mxu0 %v3712_v17  ;;  %v3102_v16 = vpop.eup %3101  ;;  %v1759_v26 = vadd.f32 1.0, %v3100_v13 }
 0x3de   : > { %2724 = vmatpush1.msra.mxu0 %v2490_v54  ;;  %2787 = vmatprep.mubr.f32.mxu0 %v3115_v2  ;;  %v1760_v25 = vadd.f32 1.0, %v3102_v16 }
 0x3df   : > { %2796 = vmatprep.subr.mxu0 %v2404_v15  ;;  %v1761_v33 = vmul.f32 %v1759_v26, %v1745_v14 }
 0x3e0   : > { %v1762_v59 = vmul.f32 %v1760_v25, %v1746_v51 }
 0x3e1   : > { %1763 = vst [vmem:[%s3889_s21] sm:$0xff] %v1761_v33 }
 0x3e2   : > { %1764 = vst [vmem:[%s3889_s21 + $0x8] sm:$0xff] %v1762_v59 }
 0x3e5   : > { %2789 = vmatmul.mubr.f32.vlgmr.msra.gmra.mrb[4].mxu0 %v3678_v61 }
 0x3e6   : > { %2798 = vmatpush1.msra.mxu0 %v2406_v19  ;;  %2861 = vmatprep.mubr.f32.mxu0 %v3115_v2 }
 0x3ed   : > { %2863 = vmatmul.mubr.f32.vlgmr.msra.gmra.mrb[4].mxu0 %v3678_v61 }
 0x4c0   : > { %v2864_v17 = vpop.f32.mrb[4].mxu0 }
 0x4c1   : > { %v2983_v39 = vadd.f32 %v2864_v17, %v1275_v31  ;;  %v2866_v41 = vpop.f32.mrb[5].mxu0 }
 0x4c2   : > { %v2984_v53 = vadd.f32 %v2866_v41, %v1275_v31 }
 0x4c3   : > { %v2873_v42 = vmul.f32 0.044715, %v2983_v39  ;;  %v2871_v1 = vmul.f32 0.7978846, %v2983_v39  ;;  %v2869_v58 = vmul.f32 0.5, %v2983_v39 }
 0x4c4   : > { %v2874_v27 = vmul.f32 0.044715, %v2984_v53  ;;  %v2872_v37 = vmul.f32 0.7978846, %v2984_v53  ;;  %v2870_v20 = vmul.f32 0.5, %v2984_v53 }
 0x4c5   : > { %v2875_v50 = vmul.f32 %v2983_v39, %v2873_v42 }
 0x4c6   : > { %v2876_v7 = vmul.f32 %v2984_v53, %v2874_v27 }
 0x4c7   : > { %v2877_v8 = vadd.f32 1.0, %v2875_v50 }
 0x4c8   : > { %v2878_v57 = vadd.f32 1.0, %v2876_v7 }
 0x4c9   : > { %v2879_v34 = vmul.f32 %v2877_v8, %v2871_v1 }
 0x4ca   : > { %v2880_v48 = vmul.f32 %v2878_v57, %v2872_v37 }
 0x4cb   : > { %3103 = vtanh.f32 %v2879_v34 }
 0x4cc   : > { %3105 = vtanh.f32 %v2880_v48 }
 0x4d5   : > { %v3104_v2 = vpop.eup %3103 }
 0x4d6   : > { %v3106_v61 = vpop.eup %3105  ;;  %v2883_v9 = vadd.f32 1.0, %v3104_v2 }
 0x4d7   : > { %v2884_v45 = vadd.f32 1.0, %v3106_v61 }
 0x4d8   : > { %v2885_v46 = vmul.f32 %v2883_v9, %v2869_v58 }
 0x4d9   : > { %v2886_v5 = vmul.f32 %v2884_v45, %v2870_v20 }
 0x4da   : > { %2967 = vst [vmem:[%s3889_s21 + $0x10] sm:$0xff] %v2885_v46 }
 0x4db   : > { %2968 = vst [vmem:[%s3889_s21 + $0x18] sm:$0xff] %v2886_v5 }
 0x4dc PF: > { %s18_s27 = sadd.s32 1, %s3113_s27  }
 0x4dd   : > { %p15_p4 = scmp.ge.s32.totalorder %s18_s27, 4  }
 0x4df   :  { %17 = sbr.rel (!%p15_p4) target bundleno = 1 (0x1), region = 84 }

</bundles_post_ra>
